<compile_context>
chip_gen: v7x
topology: tpu7x:2x2x1
jax: 0.10.0
libtpu: 0.0.40
codegen_flags: <defaults>
</compile_context>

<pallas_src>
import functools

import jax
import jax.numpy as jnp
from jax.experimental import pallas as pl
from jax.experimental.pallas import tpu as pltpu


MATMUL_DTYPE = jnp.float32   # jnp.bfloat16 on v5e/v6e/v7x for ~2x MXU rate
                             # (requires loosening the f32 reference tolerance)


# ---------------------------------------------------------------------------
# Fused whole-network Pallas kernel (one batch element per grid step)
# ---------------------------------------------------------------------------
def _resnet_kernel(x_ref, w_ref, b_ref, o_ref, *, H, W, Cin, Cout, Cp, K, R):
    """Whole network, VMEM-resident, channel-major / lane-dense.

    x_ref: (1, Cin, H*W)      activation, spatial axis in lanes
    w_ref: (L, Cp, K*K*Cp)    packed weights, L = 2 + 2R layers
    b_ref: (L, Cp, 1)         packed biases
    o_ref: (1, Cout, H*W)
    """
    HW = H * W
    pad = K // 2
    f32 = jnp.float32

    # Column-validity masks per horizontal tap offset sx in [-pad, pad],
    # hoisted out of every conv (JAX does not CSE broadcasts).
    col = jax.lax.broadcasted_iota(jnp.int32, (Cp, HW), 1) % W
    col_ok = [(col + sx >= 0) & (col + sx < W) for sx in range(-pad, pad + 1)]

    def window(a, dy, dx):
        """window[c, i*W+j] = a[c, i+dy-pad, j+dx-pad]  (zeros outside image)."""
        s = (dy - pad) * W + (dx - pad)            # flat lane shift for this tap
        if s > 0:
            win = jnp.concatenate([a[:, s:], jnp.zeros((Cp, s), f32)], axis=1)
        elif s < 0:
            win = jnp.concatenate([jnp.zeros((Cp, -s), f32), a[:, :s]], axis=1)
        else:
            win = a
        sx = dx - pad
        if sx != 0:                                # kill row-wrap lanes
            win = jnp.where(col_ok[sx + pad], win, 0.0)
        return win                                 # (Cp, HW), lane-dense

    def conv(a, l):
        """'same' KxK conv of a:(Cp, HW) with packed layer-l weights."""
        w = w_ref[l].astype(MATMUL_DTYPE)          # (Cp, K*K*Cp)
        acc = jnp.zeros((Cp, HW), f32)
        for dy in range(K):
            for dx in range(K):
                kk = dy * K + dx
                acc = acc + jnp.dot(
                    w[:, kk * Cp:(kk + 1) * Cp],
                    window(a, dy, dx).astype(MATMUL_DTYPE),
                    preferred_element_type=f32)
        return acc + b_ref[l]                      # bias (Cp,1) lane-broadcast

    # Input: pad channels to Cp.  Padded weight columns/rows and biases are
    # zero, so padded channels stay exactly zero through every layer.
    x = x_ref[0].astype(f32)                       # (Cin, HW)
    if Cp > Cin:
        x = jnp.concatenate([x, jnp.zeros((Cp - Cin, HW), f32)], axis=0)

    a = conv(x, 0)                                 # head

    def resblock(r, a):                            # conv -> ReLU -> conv -> +x
        y = jnp.maximum(conv(a, 1 + 2 * r), 0.0)
        return a + conv(y, 2 + 2 * r)

    a = jax.lax.fori_loop(0, R, resblock, a)

    out = conv(a, 1 + 2 * R)                       # tail
    o_ref[0] = out[:Cout, :]                       # lane-dense (Cout, HW) store


@functools.lru_cache(maxsize=None)
def _build_resnet_call(B, H, W, Cin, Cout, Cp, K, R):
    assert K % 2 == 1, "only odd kernel_size matches PyTorch 'same' padding"
    L = 2 + 2 * R
    KKC = K * K * Cp
    HW = H * W

    kernel = functools.partial(_resnet_kernel, H=H, W=W, Cin=Cin, Cout=Cout,
                               Cp=Cp, K=K, R=R)

    return pl.pallas_call(
        kernel,
        out_shape=jax.ShapeDtypeStruct((B, Cout, HW), jnp.float32),
        grid_spec=pltpu.PrefetchScalarGridSpec(
            num_scalar_prefetch=0,
            grid=(B,),
            in_specs=[
                pl.BlockSpec((1, Cin, HW), lambda b: (b, 0, 0)),   # activation
                pl.BlockSpec((L, Cp, KKC), lambda b: (0, 0, 0)),   # weight slab
                pl.BlockSpec((L, Cp, 1), lambda b: (0, 0, 0)),     # bias slab
            ],
            out_specs=pl.BlockSpec((1, Cout, HW), lambda b: (b, 0, 0)),
        ),
        compiler_params=pltpu.CompilerParams(
            dimension_semantics=("parallel",)),
    )


# ---------------------------------------------------------------------------
# Weight packing: (K*K, cin, cout), (1, cout) -> (Cp, K*K*Cp), (Cp, 1)
# column ordering of the packed weight is (dy*K+dx, cin), matching window().
# ---------------------------------------------------------------------------
def _pack_conv(w, b, c_pad):
    kk, cin, cout = w.shape
    wt = jnp.transpose(w, (2, 0, 1))                       # (cout, K*K, cin)
    wt = jnp.pad(wt, ((0, c_pad - cout), (0, 0), (0, c_pad - cin)))
    wp = wt.reshape(c_pad, kk * c_pad)
    bp = jnp.pad(b[0], (0, c_pad - cout)).reshape(c_pad, 1)
    return wp, bp


# ---------------------------------------------------------------------------
# Parameter init (deterministic, PyTorch-Conv2d-like uniform bounds)
# ---------------------------------------------------------------------------
def init_conv_params(key, cin, cout, k):
    kw, kb = jax.random.split(key)
    fan_in = cin * k * k
    bound = 1.0 / (fan_in ** 0.5)
    w = jax.random.uniform(kw, (k * k, cin, cout), jnp.float32, -bound, bound)
    b = jax.random.uniform(kb, (1, cout), jnp.float32, -bound, bound)
    return w, b


def init_resnet_params(key, in_channels, out_channels, n_feats, kernel_size,
                       n_resblocks):
    keys = jax.random.split(key, 2 + 2 * n_resblocks)
    params = {
        "head": init_conv_params(keys[0], in_channels, n_feats, kernel_size),
        "blocks": [],
        "tail": init_conv_params(keys[1], n_feats, out_channels, kernel_size),
    }
    for i in range(n_resblocks):
        c1 = init_conv_params(keys[2 + 2 * i], n_feats, n_feats, kernel_size)
        c2 = init_conv_params(keys[3 + 2 * i], n_feats, n_feats, kernel_size)
        params["blocks"].append((c1, c2))
    return params


# ---------------------------------------------------------------------------
# ResNet forward (NCHW in / NCHW out — no transposes, only free reshapes)
# ---------------------------------------------------------------------------
def resnet_forward(x_nchw, params):
    B, Cin, H, W = x_nchw.shape
    w_head, b_head = params["head"]
    KK, _, F = w_head.shape
    K = int(round(KK ** 0.5))
    w_tail, b_tail = params["tail"]
    Cout = w_tail.shape[-1]
    R = len(params["blocks"])
    Cp = -(-max(Cin, F, Cout) // 8) * 8          # channel pad (sublane align)

    layers = [(w_head, b_head)]
    for c1, c2 in params["blocks"]:
        layers += [c1, c2]
    layers.append((w_tail, b_tail))
    packed = [_pack_conv(w, b, Cp) for (w, b) in layers]
    w_slab = jnp.stack([p[0] for p in packed])   # (L, Cp, K*K*Cp)
    b_slab = jnp.stack([p[1] for p in packed])   # (L, Cp, 1)

    x = x_nchw.astype(jnp.float32).reshape(B, Cin, H * W)   # NCHW, flat spatial
    call = _build_resnet_call(B, H, W, Cin, Cout, Cp, K, R)
    out = call(x, w_slab, b_slab)                            # (B, Cout, H*W)
    return out.reshape(B, Cout, H, W)                        # NCHW


# ---------------------------------------------------------------------------
# Pure-JAX reference (for correctness check only)
# ---------------------------------------------------------------------------
def _conv_ref(x_nhwc, w, b, relu=False, residual=None):
    KK, Cin, Cout = w.shape
    K = int(round(KK ** 0.5))
    w_hwio = w.reshape(K, K, Cin, Cout)
    out = jax.lax.conv_general_dilated(
        x_nhwc, w_hwio, window_strides=(1, 1), padding="SAME",
        dimension_numbers=("NHWC", "HWIO", "NHWC"))
    out = out + b[0]
    if relu:
        out = jnp.maximum(out, 0.0)
    if residual is not None:
        out = out + residual
    return out


def resnet_ref(x_nchw, params):
    x = jnp.transpose(x_nchw.astype(jnp.float32), (0, 2, 3, 1))
    w, b = params["head"]
    x = _conv_ref(x, w, b)
    for (w1, b1), (w2, b2) in params["blocks"]:
        y = _conv_ref(x, w1, b1, relu=True)
        x = _conv_ref(y, w2, b2, residual=x)
    w, b = params["tail"]
    x = _conv_ref(x, w, b)
    return jnp.transpose(x, (0, 3, 1, 2))


if __name__ == "__main__":
    # Small, deterministic config consistent with the module's __init__.
    B, in_channels, out_channels = 2, 1, 1
    n_feats, kernel_size, n_resblocks = 8, 3, 2
    H = W = 16

    key = jax.random.PRNGKey(0)
    k_in, k_params = jax.random.split(key)
    x = jax.random.normal(k_in, (B, in_channels, H, W), jnp.float32)
    params = init_resnet_params(k_params, in_channels, out_channels,
                                n_feats, kernel_size, n_resblocks)

    out = jax.block_until_ready(resnet_forward(x, params))
    assert out.shape == (B, out_channels, H, W)

    ref = jax.block_until_ready(resnet_ref(x, params))
    assert jnp.allclose(out, ref, atol=1e-4, rtol=1e-4)

    print("KERNEL_OK")
</pallas_src>

<mosaic_0001>
module attributes {stable_mosaic.version = 11 : i64} {
  func.func @_resnet_kernel(%arg0: i32, %arg1: memref<1x1x256xf32, #tpu.memory_space<vmem>>, %arg2: memref<6x8x72xf32, #tpu.memory_space<vmem>>, %arg3: memref<6x8x1xf32, #tpu.memory_space<vmem>>, %arg4: memref<1x1x256xf32, #tpu.memory_space<vmem>>) attributes {dimension_semantics = [#tpu.dimension_semantics<parallel>], iteration_bounds = array<i64: 2>, scalar_prefetch = 0 : i64, scratch_operands = 0 : i64, tpu.core_type = #tpu.core_type<tc>, window_params = [{transform_indices = @transform_0, window_bounds = array<i64: 1, 1, 256>}, {pipeline_mode = #tpu.pipeline_mode<synchronous>, transform_indices = @transform_1, window_bounds = array<i64: 6, 8, 72>}, {pipeline_mode = #tpu.pipeline_mode<synchronous>, transform_indices = @transform_2, window_bounds = array<i64: 6, 8, 1>}, {transform_indices = @transform_3, window_bounds = array<i64: 1, 1, 256>}]} {
    %0 = tpu.iota {dimensions = array<i32: 1>} : vector<8x256xi32>
    %c16_i32 = arith.constant 16 : i32
    %c0_i32 = arith.constant 0 : i32
    %1 = arith.cmpi eq, %c16_i32, %c0_i32 : i32
    %c1_i32 = arith.constant 1 : i32
    %2 = arith.select %1, %c1_i32, %c16_i32 : i32
    %3 = vector.broadcast %2 : i32 to vector<8x256xi32>
    %4 = arith.remsi %0, %3 : vector<8x256xi32>
    %c0_i32_0 = arith.constant 0 : i32
    %5 = vector.broadcast %c0_i32_0 : i32 to vector<8x256xi32>
    %6 = arith.cmpi ne, %4, %5 : vector<8x256xi32>
    %c0_i32_1 = arith.constant 0 : i32
    %7 = vector.broadcast %c0_i32_1 : i32 to vector<8x256xi32>
    %8 = arith.cmpi slt, %4, %7 : vector<8x256xi32>
    %c0_i32_2 = arith.constant 0 : i32
    %9 = arith.cmpi slt, %2, %c0_i32_2 : i32
    %10 = vector.broadcast %9 : i1 to vector<8x256xi1>
    %11 = vector.broadcast %10 : vector<8x256xi1> to vector<8x256xi1>
    %12 = arith.xori %8, %11 : vector<8x256xi1>
    %13 = arith.andi %12, %6 : vector<8x256xi1>
    %14 = vector.broadcast %2 : i32 to vector<8x256xi32>
    %15 = arith.addi %4, %14 : vector<8x256xi32>
    %16 = arith.select %13, %15, %4 : vector<8x256xi1>, vector<8x256xi32>
    %c-1_i32 = arith.constant -1 : i32
    %17 = vector.broadcast %c-1_i32 : i32 to vector<8x256xi32>
    %18 = arith.addi %16, %17 : vector<8x256xi32>
    %c0_i32_3 = arith.constant 0 : i32
    %19 = vector.broadcast %c0_i32_3 : i32 to vector<8x256xi32>
    %20 = arith.cmpi sge, %18, %19 : vector<8x256xi32>
    %c-1_i32_4 = arith.constant -1 : i32
    %21 = vector.broadcast %c-1_i32_4 : i32 to vector<8x256xi32>
    %22 = arith.addi %16, %21 : vector<8x256xi32>
    %c16_i32_5 = arith.constant 16 : i32
    %23 = vector.broadcast %c16_i32_5 : i32 to vector<8x256xi32>
    %24 = arith.cmpi slt, %22, %23 : vector<8x256xi32>
    %25 = arith.andi %20, %24 : vector<8x256xi1>
    %c1_i32_6 = arith.constant 1 : i32
    %26 = vector.broadcast %c1_i32_6 : i32 to vector<8x256xi32>
    %27 = arith.addi %16, %26 : vector<8x256xi32>
    %c0_i32_7 = arith.constant 0 : i32
    %28 = vector.broadcast %c0_i32_7 : i32 to vector<8x256xi32>
    %29 = arith.cmpi sge, %27, %28 : vector<8x256xi32>
    %c1_i32_8 = arith.constant 1 : i32
    %30 = vector.broadcast %c1_i32_8 : i32 to vector<8x256xi32>
    %31 = arith.addi %16, %30 : vector<8x256xi32>
    %c16_i32_9 = arith.constant 16 : i32
    %32 = vector.broadcast %c16_i32_9 : i32 to vector<8x256xi32>
    %33 = arith.cmpi slt, %31, %32 : vector<8x256xi32>
    %34 = arith.andi %29, %33 : vector<8x256xi1>
    %c0 = arith.constant 0 : index
    %c0_10 = arith.constant 0 : index
    %c0_11 = arith.constant 0 : index
    %35 = vector.load %arg1[%c0, %c0_10, %c0_11] : memref<1x1x256xf32, #tpu.memory_space<vmem>>, vector<1x1x256xf32>
    %36 = vector.shape_cast %35 : vector<1x1x256xf32> to vector<1x256xf32>
    %cst = arith.constant 0.000000e+00 : f32
    %37 = vector.broadcast %cst : f32 to vector<7x256xf32>
    %38 = tpu.concatenate %36, %37 in 0 : vector<1x256xf32>, vector<7x256xf32> -> vector<8x256xf32>
    %c0_12 = arith.constant 0 : index
    %c0_13 = arith.constant 0 : index
    %c0_14 = arith.constant 0 : index
    %39 = vector.load %arg2[%c0_12, %c0_13, %c0_14] : memref<6x8x72xf32, #tpu.memory_space<vmem>>, vector<1x8x72xf32>
    %40 = vector.shape_cast %39 : vector<1x8x72xf32> to vector<8x72xf32>
    %cst_15 = arith.constant 0.000000e+00 : f32
    %41 = vector.broadcast %cst_15 : f32 to vector<8x256xf32>
    %42 = vector.extract_strided_slice %40 {offsets = [0, 0], sizes = [8, 8], strides = [1, 1]} : vector<8x72xf32> to vector<8x8xf32>
    %cst_16 = arith.constant 0.000000e+00 : f32
    %43 = vector.broadcast %cst_16 : f32 to vector<8x17xf32>
    %44 = vector.extract_strided_slice %38 {offsets = [0, 0], sizes = [8, 239], strides = [1, 1]} : vector<8x256xf32> to vector<8x239xf32>
    %45 = tpu.concatenate %43, %44 in 1 : vector<8x17xf32>, vector<8x239xf32> -> vector<8x256xf32>
    %cst_17 = arith.constant 0.000000e+00 : f32
    %46 = vector.broadcast %cst_17 : f32 to vector<8x256xf32>
    %47 = arith.select %25, %45, %46 : vector<8x256xi1>, vector<8x256xf32>
    %cst_18 = arith.constant dense<0.000000e+00> : vector<8x256xf32>
    %48 = tpu.matmul %42, %47, %cst_18 {dimension_numbers = #tpu.dot_dimension_numbers<[1], [0], [0], [1], [0, 0, 1, 1], [], []>} : vector<8x8xf32>, vector<8x256xf32>, vector<8x256xf32> -> vector<8x256xf32>
    %49 = arith.addf %41, %48 : vector<8x256xf32>
    %50 = vector.extract_strided_slice %40 {offsets = [0, 8], sizes = [8, 8], strides = [1, 1]} : vector<8x72xf32> to vector<8x8xf32>
    %cst_19 = arith.constant 0.000000e+00 : f32
    %51 = vector.broadcast %cst_19 : f32 to vector<8x16xf32>
    %52 = vector.extract_strided_slice %38 {offsets = [0, 0], sizes = [8, 240], strides = [1, 1]} : vector<8x256xf32> to vector<8x240xf32>
    %53 = tpu.concatenate %51, %52 in 1 : vector<8x16xf32>, vector<8x240xf32> -> vector<8x256xf32>
    %cst_20 = arith.constant dense<0.000000e+00> : vector<8x256xf32>
    %54 = tpu.matmul %50, %53, %cst_20 {dimension_numbers = #tpu.dot_dimension_numbers<[1], [0], [0], [1], [0, 0, 1, 1], [], []>} : vector<8x8xf32>, vector<8x256xf32>, vector<8x256xf32> -> vector<8x256xf32>
    %55 = arith.addf %49, %54 : vector<8x256xf32>
    %56 = vector.extract_strided_slice %40 {offsets = [0, 16], sizes = [8, 8], strides = [1, 1]} : vector<8x72xf32> to vector<8x8xf32>
    %cst_21 = arith.constant 0.000000e+00 : f32
    %57 = vector.broadcast %cst_21 : f32 to vector<8x15xf32>
    %58 = vector.extract_strided_slice %38 {offsets = [0, 0], sizes = [8, 241], strides = [1, 1]} : vector<8x256xf32> to vector<8x241xf32>
    %59 = tpu.concatenate %57, %58 in 1 : vector<8x15xf32>, vector<8x241xf32> -> vector<8x256xf32>
    %cst_22 = arith.constant 0.000000e+00 : f32
    %60 = vector.broadcast %cst_22 : f32 to vector<8x256xf32>
    %61 = arith.select %34, %59, %60 : vector<8x256xi1>, vector<8x256xf32>
    %cst_23 = arith.constant dense<0.000000e+00> : vector<8x256xf32>
    %62 = tpu.matmul %56, %61, %cst_23 {dimension_numbers = #tpu.dot_dimension_numbers<[1], [0], [0], [1], [0, 0, 1, 1], [], []>} : vector<8x8xf32>, vector<8x256xf32>, vector<8x256xf32> -> vector<8x256xf32>
    %63 = arith.addf %55, %62 : vector<8x256xf32>
    %64 = vector.extract_strided_slice %40 {offsets = [0, 24], sizes = [8, 8], strides = [1, 1]} : vector<8x72xf32> to vector<8x8xf32>
    %cst_24 = arith.constant 0.000000e+00 : f32
    %65 = vector.broadcast %cst_24 : f32 to vector<8x1xf32>
    %66 = vector.extract_strided_slice %38 {offsets = [0, 0], sizes = [8, 255], strides = [1, 1]} : vector<8x256xf32> to vector<8x255xf32>
    %67 = tpu.concatenate %65, %66 in 1 : vector<8x1xf32>, vector<8x255xf32> -> vector<8x256xf32>
    %cst_25 = arith.constant 0.000000e+00 : f32
    %68 = vector.broadcast %cst_25 : f32 to vector<8x256xf32>
    %69 = arith.select %25, %67, %68 : vector<8x256xi1>, vector<8x256xf32>
    %cst_26 = arith.constant dense<0.000000e+00> : vector<8x256xf32>
    %70 = tpu.matmul %64, %69, %cst_26 {dimension_numbers = #tpu.dot_dimension_numbers<[1], [0], [0], [1], [0, 0, 1, 1], [], []>} : vector<8x8xf32>, vector<8x256xf32>, vector<8x256xf32> -> vector<8x256xf32>
    %71 = arith.addf %63, %70 : vector<8x256xf32>
    %72 = vector.extract_strided_slice %40 {offsets = [0, 32], sizes = [8, 8], strides = [1, 1]} : vector<8x72xf32> to vector<8x8xf32>
    %cst_27 = arith.constant dense<0.000000e+00> : vector<8x256xf32>
    %73 = tpu.matmul %72, %38, %cst_27 {dimension_numbers = #tpu.dot_dimension_numbers<[1], [0], [0], [1], [0, 0, 1, 1], [], []>} : vector<8x8xf32>, vector<8x256xf32>, vector<8x256xf32> -> vector<8x256xf32>
    %74 = arith.addf %71, %73 : vector<8x256xf32>
    %75 = vector.extract_strided_slice %40 {offsets = [0, 40], sizes = [8, 8], strides = [1, 1]} : vector<8x72xf32> to vector<8x8xf32>
    %76 = vector.extract_strided_slice %38 {offsets = [0, 1], sizes = [8, 255], strides = [1, 1]} : vector<8x256xf32> to vector<8x255xf32>
    %cst_28 = arith.constant 0.000000e+00 : f32
    %77 = vector.broadcast %cst_28 : f32 to vector<8x1xf32>
    %78 = tpu.concatenate %76, %77 in 1 : vector<8x255xf32>, vector<8x1xf32> -> vector<8x256xf32>
    %cst_29 = arith.constant 0.000000e+00 : f32
    %79 = vector.broadcast %cst_29 : f32 to vector<8x256xf32>
    %80 = arith.select %34, %78, %79 : vector<8x256xi1>, vector<8x256xf32>
    %cst_30 = arith.constant dense<0.000000e+00> : vector<8x256xf32>
    %81 = tpu.matmul %75, %80, %cst_30 {dimension_numbers = #tpu.dot_dimension_numbers<[1], [0], [0], [1], [0, 0, 1, 1], [], []>} : vector<8x8xf32>, vector<8x256xf32>, vector<8x256xf32> -> vector<8x256xf32>
    %82 = arith.addf %74, %81 : vector<8x256xf32>
    %83 = vector.extract_strided_slice %40 {offsets = [0, 48], sizes = [8, 8], strides = [1, 1]} : vector<8x72xf32> to vector<8x8xf32>
    %84 = vector.extract_strided_slice %38 {offsets = [0, 15], sizes = [8, 241], strides = [1, 1]} : vector<8x256xf32> to vector<8x241xf32>
    %cst_31 = arith.constant 0.000000e+00 : f32
    %85 = vector.broadcast %cst_31 : f32 to vector<8x15xf32>
    %86 = tpu.concatenate %84, %85 in 1 : vector<8x241xf32>, vector<8x15xf32> -> vector<8x256xf32>
    %cst_32 = arith.constant 0.000000e+00 : f32
    %87 = vector.broadcast %cst_32 : f32 to vector<8x256xf32>
    %88 = arith.select %25, %86, %87 : vector<8x256xi1>, vector<8x256xf32>
    %cst_33 = arith.constant dense<0.000000e+00> : vector<8x256xf32>
    %89 = tpu.matmul %83, %88, %cst_33 {dimension_numbers = #tpu.dot_dimension_numbers<[1], [0], [0], [1], [0, 0, 1, 1], [], []>} : vector<8x8xf32>, vector<8x256xf32>, vector<8x256xf32> -> vector<8x256xf32>
    %90 = arith.addf %82, %89 : vector<8x256xf32>
    %91 = vector.extract_strided_slice %40 {offsets = [0, 56], sizes = [8, 8], strides = [1, 1]} : vector<8x72xf32> to vector<8x8xf32>
    %92 = vector.extract_strided_slice %38 {offsets = [0, 16], sizes = [8, 240], strides = [1, 1]} : vector<8x256xf32> to vector<8x240xf32>
    %cst_34 = arith.constant 0.000000e+00 : f32
    %93 = vector.broadcast %cst_34 : f32 to vector<8x16xf32>
    %94 = tpu.concatenate %92, %93 in 1 : vector<8x240xf32>, vector<8x16xf32> -> vector<8x256xf32>
    %cst_35 = arith.constant dense<0.000000e+00> : vector<8x256xf32>
    %95 = tpu.matmul %91, %94, %cst_35 {dimension_numbers = #tpu.dot_dimension_numbers<[1], [0], [0], [1], [0, 0, 1, 1], [], []>} : vector<8x8xf32>, vector<8x256xf32>, vector<8x256xf32> -> vector<8x256xf32>
    %96 = arith.addf %90, %95 : vector<8x256xf32>
    %97 = vector.extract_strided_slice %40 {offsets = [0, 64], sizes = [8, 8], strides = [1, 1]} : vector<8x72xf32> to vector<8x8xf32>
    %98 = vector.extract_strided_slice %38 {offsets = [0, 17], sizes = [8, 239], strides = [1, 1]} : vector<8x256xf32> to vector<8x239xf32>
    %cst_36 = arith.constant 0.000000e+00 : f32
    %99 = vector.broadcast %cst_36 : f32 to vector<8x17xf32>
    %100 = tpu.concatenate %98, %99 in 1 : vector<8x239xf32>, vector<8x17xf32> -> vector<8x256xf32>
    %cst_37 = arith.constant 0.000000e+00 : f32
    %101 = vector.broadcast %cst_37 : f32 to vector<8x256xf32>
    %102 = arith.select %34, %100, %101 : vector<8x256xi1>, vector<8x256xf32>
    %cst_38 = arith.constant dense<0.000000e+00> : vector<8x256xf32>
    %103 = tpu.matmul %97, %102, %cst_38 {dimension_numbers = #tpu.dot_dimension_numbers<[1], [0], [0], [1], [0, 0, 1, 1], [], []>} : vector<8x8xf32>, vector<8x256xf32>, vector<8x256xf32> -> vector<8x256xf32>
    %104 = arith.addf %96, %103 : vector<8x256xf32>
    %c0_39 = arith.constant 0 : index
    %c0_40 = arith.constant 0 : index
    %c0_41 = arith.constant 0 : index
    %105 = vector.load %arg3[%c0_39, %c0_40, %c0_41] : memref<6x8x1xf32, #tpu.memory_space<vmem>>, vector<1x8x1xf32>
    %106 = vector.shape_cast %105 : vector<1x8x1xf32> to vector<8x1xf32>
    %107 = vector.broadcast %106 : vector<8x1xf32> to vector<8x256xf32>
    %108 = arith.addf %104, %107 : vector<8x256xf32>
    %c0_i32_42 = arith.constant 0 : i32
    %c2_i32 = arith.constant 2 : i32
    %109 = arith.addi %c0_i32_42, %c2_i32 : i32
    %c1_i32_43 = arith.constant 1 : i32
    %110 = scf.for %arg5 = %c0_i32_42 to %109 step %c1_i32_43 iter_args(%arg6 = %108) -> (vector<8x256xf32>)  : i32 {
      %c2_i32_77 = arith.constant 2 : i32
      %185 = arith.muli %c2_i32_77, %arg5 : i32
      %c1_i32_78 = arith.constant 1 : i32
      %186 = arith.addi %c1_i32_78, %185 : i32
      %187 = arith.index_cast %186 : i32 to index
      %c0_79 = arith.constant 0 : index
      %c0_80 = arith.constant 0 : index
      %188 = vector.load %arg2[%187, %c0_79, %c0_80] : memref<6x8x72xf32, #tpu.memory_space<vmem>>, vector<1x8x72xf32>
      %189 = vector.shape_cast %188 : vector<1x8x72xf32> to vector<8x72xf32>
      %cst_81 = arith.constant 0.000000e+00 : f32
      %190 = vector.broadcast %cst_81 : f32 to vector<8x256xf32>
      %191 = vector.extract_strided_slice %189 {offsets = [0, 0], sizes = [8, 8], strides = [1, 1]} : vector<8x72xf32> to vector<8x8xf32>
      %cst_82 = arith.constant 0.000000e+00 : f32
      %192 = vector.broadcast %cst_82 : f32 to vector<8x17xf32>
      %193 = vector.extract_strided_slice %arg6 {offsets = [0, 0], sizes = [8, 239], strides = [1, 1]} : vector<8x256xf32> to vector<8x239xf32>
      %194 = tpu.concatenate %192, %193 in 1 : vector<8x17xf32>, vector<8x239xf32> -> vector<8x256xf32>
      %cst_83 = arith.constant 0.000000e+00 : f32
      %195 = vector.broadcast %cst_83 : f32 to vector<8x256xf32>
      %196 = arith.select %25, %194, %195 : vector<8x256xi1>, vector<8x256xf32>
      %cst_84 = arith.constant dense<0.000000e+00> : vector<8x256xf32>
      %197 = tpu.matmul %191, %196, %cst_84 {dimension_numbers = #tpu.dot_dimension_numbers<[1], [0], [0], [1], [0, 0, 1, 1], [], []>} : vector<8x8xf32>, vector<8x256xf32>, vector<8x256xf32> -> vector<8x256xf32>
      %198 = arith.addf %190, %197 : vector<8x256xf32>
      %199 = vector.extract_strided_slice %189 {offsets = [0, 8], sizes = [8, 8], strides = [1, 1]} : vector<8x72xf32> to vector<8x8xf32>
      %cst_85 = arith.constant 0.000000e+00 : f32
      %200 = vector.broadcast %cst_85 : f32 to vector<8x16xf32>
      %201 = vector.extract_strided_slice %arg6 {offsets = [0, 0], sizes = [8, 240], strides = [1, 1]} : vector<8x256xf32> to vector<8x240xf32>
      %202 = tpu.concatenate %200, %201 in 1 : vector<8x16xf32>, vector<8x240xf32> -> vector<8x256xf32>
      %cst_86 = arith.constant dense<0.000000e+00> : vector<8x256xf32>
      %203 = tpu.matmul %199, %202, %cst_86 {dimension_numbers = #tpu.dot_dimension_numbers<[1], [0], [0], [1], [0, 0, 1, 1], [], []>} : vector<8x8xf32>, vector<8x256xf32>, vector<8x256xf32> -> vector<8x256xf32>
      %204 = arith.addf %198, %203 : vector<8x256xf32>
      %205 = vector.extract_strided_slice %189 {offsets = [0, 16], sizes = [8, 8], strides = [1, 1]} : vector<8x72xf32> to vector<8x8xf32>
      %cst_87 = arith.constant 0.000000e+00 : f32
      %206 = vector.broadcast %cst_87 : f32 to vector<8x15xf32>
      %207 = vector.extract_strided_slice %arg6 {offsets = [0, 0], sizes = [8, 241], strides = [1, 1]} : vector<8x256xf32> to vector<8x241xf32>
      %208 = tpu.concatenate %206, %207 in 1 : vector<8x15xf32>, vector<8x241xf32> -> vector<8x256xf32>
      %cst_88 = arith.constant 0.000000e+00 : f32
      %209 = vector.broadcast %cst_88 : f32 to vector<8x256xf32>
      %210 = arith.select %34, %208, %209 : vector<8x256xi1>, vector<8x256xf32>
      %cst_89 = arith.constant dense<0.000000e+00> : vector<8x256xf32>
      %211 = tpu.matmul %205, %210, %cst_89 {dimension_numbers = #tpu.dot_dimension_numbers<[1], [0], [0], [1], [0, 0, 1, 1], [], []>} : vector<8x8xf32>, vector<8x256xf32>, vector<8x256xf32> -> vector<8x256xf32>
      %212 = arith.addf %204, %211 : vector<8x256xf32>
      %213 = vector.extract_strided_slice %189 {offsets = [0, 24], sizes = [8, 8], strides = [1, 1]} : vector<8x72xf32> to vector<8x8xf32>
      %cst_90 = arith.constant 0.000000e+00 : f32
      %214 = vector.broadcast %cst_90 : f32 to vector<8x1xf32>
      %215 = vector.extract_strided_slice %arg6 {offsets = [0, 0], sizes = [8, 255], strides = [1, 1]} : vector<8x256xf32> to vector<8x255xf32>
      %216 = tpu.concatenate %214, %215 in 1 : vector<8x1xf32>, vector<8x255xf32> -> vector<8x256xf32>
      %cst_91 = arith.constant 0.000000e+00 : f32
      %217 = vector.broadcast %cst_91 : f32 to vector<8x256xf32>
      %218 = arith.select %25, %216, %217 : vector<8x256xi1>, vector<8x256xf32>
      %cst_92 = arith.constant dense<0.000000e+00> : vector<8x256xf32>
      %219 = tpu.matmul %213, %218, %cst_92 {dimension_numbers = #tpu.dot_dimension_numbers<[1], [0], [0], [1], [0, 0, 1, 1], [], []>} : vector<8x8xf32>, vector<8x256xf32>, vector<8x256xf32> -> vector<8x256xf32>
      %220 = arith.addf %212, %219 : vector<8x256xf32>
      %221 = vector.extract_strided_slice %189 {offsets = [0, 32], sizes = [8, 8], strides = [1, 1]} : vector<8x72xf32> to vector<8x8xf32>
      %cst_93 = arith.constant dense<0.000000e+00> : vector<8x256xf32>
      %222 = tpu.matmul %221, %arg6, %cst_93 {dimension_numbers = #tpu.dot_dimension_numbers<[1], [0], [0], [1], [0, 0, 1, 1], [], []>} : vector<8x8xf32>, vector<8x256xf32>, vector<8x256xf32> -> vector<8x256xf32>
      %223 = arith.addf %220, %222 : vector<8x256xf32>
      %224 = vector.extract_strided_slice %189 {offsets = [0, 40], sizes = [8, 8], strides = [1, 1]} : vector<8x72xf32> to vector<8x8xf32>
      %225 = vector.extract_strided_slice %arg6 {offsets = [0, 1], sizes = [8, 255], strides = [1, 1]} : vector<8x256xf32> to vector<8x255xf32>
      %cst_94 = arith.constant 0.000000e+00 : f32
      %226 = vector.broadcast %cst_94 : f32 to vector<8x1xf32>
      %227 = tpu.concatenate %225, %226 in 1 : vector<8x255xf32>, vector<8x1xf32> -> vector<8x256xf32>
      %cst_95 = arith.constant 0.000000e+00 : f32
      %228 = vector.broadcast %cst_95 : f32 to vector<8x256xf32>
      %229 = arith.select %34, %227, %228 : vector<8x256xi1>, vector<8x256xf32>
      %cst_96 = arith.constant dense<0.000000e+00> : vector<8x256xf32>
      %230 = tpu.matmul %224, %229, %cst_96 {dimension_numbers = #tpu.dot_dimension_numbers<[1], [0], [0], [1], [0, 0, 1, 1], [], []>} : vector<8x8xf32>, vector<8x256xf32>, vector<8x256xf32> -> vector<8x256xf32>
      %231 = arith.addf %223, %230 : vector<8x256xf32>
      %232 = vector.extract_strided_slice %189 {offsets = [0, 48], sizes = [8, 8], strides = [1, 1]} : vector<8x72xf32> to vector<8x8xf32>
      %233 = vector.extract_strided_slice %arg6 {offsets = [0, 15], sizes = [8, 241], strides = [1, 1]} : vector<8x256xf32> to vector<8x241xf32>
      %cst_97 = arith.constant 0.000000e+00 : f32
      %234 = vector.broadcast %cst_97 : f32 to vector<8x15xf32>
      %235 = tpu.concatenate %233, %234 in 1 : vector<8x241xf32>, vector<8x15xf32> -> vector<8x256xf32>
      %cst_98 = arith.constant 0.000000e+00 : f32
      %236 = vector.broadcast %cst_98 : f32 to vector<8x256xf32>
      %237 = arith.select %25, %235, %236 : vector<8x256xi1>, vector<8x256xf32>
      %cst_99 = arith.constant dense<0.000000e+00> : vector<8x256xf32>
      %238 = tpu.matmul %232, %237, %cst_99 {dimension_numbers = #tpu.dot_dimension_numbers<[1], [0], [0], [1], [0, 0, 1, 1], [], []>} : vector<8x8xf32>, vector<8x256xf32>, vector<8x256xf32> -> vector<8x256xf32>
      %239 = arith.addf %231, %238 : vector<8x256xf32>
      %240 = vector.extract_strided_slice %189 {offsets = [0, 56], sizes = [8, 8], strides = [1, 1]} : vector<8x72xf32> to vector<8x8xf32>
      %241 = vector.extract_strided_slice %arg6 {offsets = [0, 16], sizes = [8, 240], strides = [1, 1]} : vector<8x256xf32> to vector<8x240xf32>
      %cst_100 = arith.constant 0.000000e+00 : f32
      %242 = vector.broadcast %cst_100 : f32 to vector<8x16xf32>
      %243 = tpu.concatenate %241, %242 in 1 : vector<8x240xf32>, vector<8x16xf32> -> vector<8x256xf32>
      %cst_101 = arith.constant dense<0.000000e+00> : vector<8x256xf32>
      %244 = tpu.matmul %240, %243, %cst_101 {dimension_numbers = #tpu.dot_dimension_numbers<[1], [0], [0], [1], [0, 0, 1, 1], [], []>} : vector<8x8xf32>, vector<8x256xf32>, vector<8x256xf32> -> vector<8x256xf32>
      %245 = arith.addf %239, %244 : vector<8x256xf32>
      %246 = vector.extract_strided_slice %189 {offsets = [0, 64], sizes = [8, 8], strides = [1, 1]} : vector<8x72xf32> to vector<8x8xf32>
      %247 = vector.extract_strided_slice %arg6 {offsets = [0, 17], sizes = [8, 239], strides = [1, 1]} : vector<8x256xf32> to vector<8x239xf32>
      %cst_102 = arith.constant 0.000000e+00 : f32
      %248 = vector.broadcast %cst_102 : f32 to vector<8x17xf32>
      %249 = tpu.concatenate %247, %248 in 1 : vector<8x239xf32>, vector<8x17xf32> -> vector<8x256xf32>
      %cst_103 = arith.constant 0.000000e+00 : f32
      %250 = vector.broadcast %cst_103 : f32 to vector<8x256xf32>
      %251 = arith.select %34, %249, %250 : vector<8x256xi1>, vector<8x256xf32>
      %cst_104 = arith.constant dense<0.000000e+00> : vector<8x256xf32>
      %252 = tpu.matmul %246, %251, %cst_104 {dimension_numbers = #tpu.dot_dimension_numbers<[1], [0], [0], [1], [0, 0, 1, 1], [], []>} : vector<8x8xf32>, vector<8x256xf32>, vector<8x256xf32> -> vector<8x256xf32>
      %253 = arith.addf %245, %252 : vector<8x256xf32>
      %254 = arith.index_cast %186 : i32 to index
      %c0_105 = arith.constant 0 : index
      %c0_106 = arith.constant 0 : index
      %255 = vector.load %arg3[%254, %c0_105, %c0_106] : memref<6x8x1xf32, #tpu.memory_space<vmem>>, vector<1x8x1xf32>
      %256 = vector.shape_cast %255 : vector<1x8x1xf32> to vector<8x1xf32>
      %257 = vector.broadcast %256 : vector<8x1xf32> to vector<8x256xf32>
      %258 = arith.addf %253, %257 : vector<8x256xf32>
      %cst_107 = arith.constant 0.000000e+00 : f32
      %259 = vector.broadcast %cst_107 : f32 to vector<8x256xf32>
      %260 = arith.maximumf %258, %259 : vector<8x256xf32>
      %c2_i32_108 = arith.constant 2 : i32
      %261 = arith.muli %c2_i32_108, %arg5 : i32
      %c2_i32_109 = arith.constant 2 : i32
      %262 = arith.addi %c2_i32_109, %261 : i32
      %263 = arith.index_cast %262 : i32 to index
      %c0_110 = arith.constant 0 : index
      %c0_111 = arith.constant 0 : index
      %264 = vector.load %arg2[%263, %c0_110, %c0_111] : memref<6x8x72xf32, #tpu.memory_space<vmem>>, vector<1x8x72xf32>
      %265 = vector.shape_cast %264 : vector<1x8x72xf32> to vector<8x72xf32>
      %cst_112 = arith.constant 0.000000e+00 : f32
      %266 = vector.broadcast %cst_112 : f32 to vector<8x256xf32>
      %267 = vector.extract_strided_slice %265 {offsets = [0, 0], sizes = [8, 8], strides = [1, 1]} : vector<8x72xf32> to vector<8x8xf32>
      %cst_113 = arith.constant 0.000000e+00 : f32
      %268 = vector.broadcast %cst_113 : f32 to vector<8x17xf32>
      %269 = vector.extract_strided_slice %260 {offsets = [0, 0], sizes = [8, 239], strides = [1, 1]} : vector<8x256xf32> to vector<8x239xf32>
      %270 = tpu.concatenate %268, %269 in 1 : vector<8x17xf32>, vector<8x239xf32> -> vector<8x256xf32>
      %cst_114 = arith.constant 0.000000e+00 : f32
      %271 = vector.broadcast %cst_114 : f32 to vector<8x256xf32>
      %272 = arith.select %25, %270, %271 : vector<8x256xi1>, vector<8x256xf32>
      %cst_115 = arith.constant dense<0.000000e+00> : vector<8x256xf32>
      %273 = tpu.matmul %267, %272, %cst_115 {dimension_numbers = #tpu.dot_dimension_numbers<[1], [0], [0], [1], [0, 0, 1, 1], [], []>} : vector<8x8xf32>, vector<8x256xf32>, vector<8x256xf32> -> vector<8x256xf32>
      %274 = arith.addf %266, %273 : vector<8x256xf32>
      %275 = vector.extract_strided_slice %265 {offsets = [0, 8], sizes = [8, 8], strides = [1, 1]} : vector<8x72xf32> to vector<8x8xf32>
      %cst_116 = arith.constant 0.000000e+00 : f32
      %276 = vector.broadcast %cst_116 : f32 to vector<8x16xf32>
      %277 = vector.extract_strided_slice %260 {offsets = [0, 0], sizes = [8, 240], strides = [1, 1]} : vector<8x256xf32> to vector<8x240xf32>
      %278 = tpu.concatenate %276, %277 in 1 : vector<8x16xf32>, vector<8x240xf32> -> vector<8x256xf32>
      %cst_117 = arith.constant dense<0.000000e+00> : vector<8x256xf32>
      %279 = tpu.matmul %275, %278, %cst_117 {dimension_numbers = #tpu.dot_dimension_numbers<[1], [0], [0], [1], [0, 0, 1, 1], [], []>} : vector<8x8xf32>, vector<8x256xf32>, vector<8x256xf32> -> vector<8x256xf32>
      %280 = arith.addf %274, %279 : vector<8x256xf32>
      %281 = vector.extract_strided_slice %265 {offsets = [0, 16], sizes = [8, 8], strides = [1, 1]} : vector<8x72xf32> to vector<8x8xf32>
      %cst_118 = arith.constant 0.000000e+00 : f32
      %282 = vector.broadcast %cst_118 : f32 to vector<8x15xf32>
      %283 = vector.extract_strided_slice %260 {offsets = [0, 0], sizes = [8, 241], strides = [1, 1]} : vector<8x256xf32> to vector<8x241xf32>
      %284 = tpu.concatenate %282, %283 in 1 : vector<8x15xf32>, vector<8x241xf32> -> vector<8x256xf32>
      %cst_119 = arith.constant 0.000000e+00 : f32
      %285 = vector.broadcast %cst_119 : f32 to vector<8x256xf32>
      %286 = arith.select %34, %284, %285 : vector<8x256xi1>, vector<8x256xf32>
      %cst_120 = arith.constant dense<0.000000e+00> : vector<8x256xf32>
      %287 = tpu.matmul %281, %286, %cst_120 {dimension_numbers = #tpu.dot_dimension_numbers<[1], [0], [0], [1], [0, 0, 1, 1], [], []>} : vector<8x8xf32>, vector<8x256xf32>, vector<8x256xf32> -> vector<8x256xf32>
      %288 = arith.addf %280, %287 : vector<8x256xf32>
      %289 = vector.extract_strided_slice %265 {offsets = [0, 24], sizes = [8, 8], strides = [1, 1]} : vector<8x72xf32> to vector<8x8xf32>
      %cst_121 = arith.constant 0.000000e+00 : f32
      %290 = vector.broadcast %cst_121 : f32 to vector<8x1xf32>
      %291 = vector.extract_strided_slice %260 {offsets = [0, 0], sizes = [8, 255], strides = [1, 1]} : vector<8x256xf32> to vector<8x255xf32>
      %292 = tpu.concatenate %290, %291 in 1 : vector<8x1xf32>, vector<8x255xf32> -> vector<8x256xf32>
      %cst_122 = arith.constant 0.000000e+00 : f32
      %293 = vector.broadcast %cst_122 : f32 to vector<8x256xf32>
      %294 = arith.select %25, %292, %293 : vector<8x256xi1>, vector<8x256xf32>
      %cst_123 = arith.constant dense<0.000000e+00> : vector<8x256xf32>
      %295 = tpu.matmul %289, %294, %cst_123 {dimension_numbers = #tpu.dot_dimension_numbers<[1], [0], [0], [1], [0, 0, 1, 1], [], []>} : vector<8x8xf32>, vector<8x256xf32>, vector<8x256xf32> -> vector<8x256xf32>
      %296 = arith.addf %288, %295 : vector<8x256xf32>
      %297 = vector.extract_strided_slice %265 {offsets = [0, 32], sizes = [8, 8], strides = [1, 1]} : vector<8x72xf32> to vector<8x8xf32>
      %cst_124 = arith.constant dense<0.000000e+00> : vector<8x256xf32>
      %298 = tpu.matmul %297, %260, %cst_124 {dimension_numbers = #tpu.dot_dimension_numbers<[1], [0], [0], [1], [0, 0, 1, 1], [], []>} : vector<8x8xf32>, vector<8x256xf32>, vector<8x256xf32> -> vector<8x256xf32>
      %299 = arith.addf %296, %298 : vector<8x256xf32>
      %300 = vector.extract_strided_slice %265 {offsets = [0, 40], sizes = [8, 8], strides = [1, 1]} : vector<8x72xf32> to vector<8x8xf32>
      %301 = vector.extract_strided_slice %260 {offsets = [0, 1], sizes = [8, 255], strides = [1, 1]} : vector<8x256xf32> to vector<8x255xf32>
      %cst_125 = arith.constant 0.000000e+00 : f32
      %302 = vector.broadcast %cst_125 : f32 to vector<8x1xf32>
      %303 = tpu.concatenate %301, %302 in 1 : vector<8x255xf32>, vector<8x1xf32> -> vector<8x256xf32>
      %cst_126 = arith.constant 0.000000e+00 : f32
      %304 = vector.broadcast %cst_126 : f32 to vector<8x256xf32>
      %305 = arith.select %34, %303, %304 : vector<8x256xi1>, vector<8x256xf32>
      %cst_127 = arith.constant dense<0.000000e+00> : vector<8x256xf32>
      %306 = tpu.matmul %300, %305, %cst_127 {dimension_numbers = #tpu.dot_dimension_numbers<[1], [0], [0], [1], [0, 0, 1, 1], [], []>} : vector<8x8xf32>, vector<8x256xf32>, vector<8x256xf32> -> vector<8x256xf32>
      %307 = arith.addf %299, %306 : vector<8x256xf32>
      %308 = vector.extract_strided_slice %265 {offsets = [0, 48], sizes = [8, 8], strides = [1, 1]} : vector<8x72xf32> to vector<8x8xf32>
      %309 = vector.extract_strided_slice %260 {offsets = [0, 15], sizes = [8, 241], strides = [1, 1]} : vector<8x256xf32> to vector<8x241xf32>
      %cst_128 = arith.constant 0.000000e+00 : f32
      %310 = vector.broadcast %cst_128 : f32 to vector<8x15xf32>
      %311 = tpu.concatenate %309, %310 in 1 : vector<8x241xf32>, vector<8x15xf32> -> vector<8x256xf32>
      %cst_129 = arith.constant 0.000000e+00 : f32
      %312 = vector.broadcast %cst_129 : f32 to vector<8x256xf32>
      %313 = arith.select %25, %311, %312 : vector<8x256xi1>, vector<8x256xf32>
      %cst_130 = arith.constant dense<0.000000e+00> : vector<8x256xf32>
      %314 = tpu.matmul %308, %313, %cst_130 {dimension_numbers = #tpu.dot_dimension_numbers<[1], [0], [0], [1], [0, 0, 1, 1], [], []>} : vector<8x8xf32>, vector<8x256xf32>, vector<8x256xf32> -> vector<8x256xf32>
      %315 = arith.addf %307, %314 : vector<8x256xf32>
      %316 = vector.extract_strided_slice %265 {offsets = [0, 56], sizes = [8, 8], strides = [1, 1]} : vector<8x72xf32> to vector<8x8xf32>
      %317 = vector.extract_strided_slice %260 {offsets = [0, 16], sizes = [8, 240], strides = [1, 1]} : vector<8x256xf32> to vector<8x240xf32>
      %cst_131 = arith.constant 0.000000e+00 : f32
      %318 = vector.broadcast %cst_131 : f32 to vector<8x16xf32>
      %319 = tpu.concatenate %317, %318 in 1 : vector<8x240xf32>, vector<8x16xf32> -> vector<8x256xf32>
      %cst_132 = arith.constant dense<0.000000e+00> : vector<8x256xf32>
      %320 = tpu.matmul %316, %319, %cst_132 {dimension_numbers = #tpu.dot_dimension_numbers<[1], [0], [0], [1], [0, 0, 1, 1], [], []>} : vector<8x8xf32>, vector<8x256xf32>, vector<8x256xf32> -> vector<8x256xf32>
      %321 = arith.addf %315, %320 : vector<8x256xf32>
      %322 = vector.extract_strided_slice %265 {offsets = [0, 64], sizes = [8, 8], strides = [1, 1]} : vector<8x72xf32> to vector<8x8xf32>
      %323 = vector.extract_strided_slice %260 {offsets = [0, 17], sizes = [8, 239], strides = [1, 1]} : vector<8x256xf32> to vector<8x239xf32>
      %cst_133 = arith.constant 0.000000e+00 : f32
      %324 = vector.broadcast %cst_133 : f32 to vector<8x17xf32>
      %325 = tpu.concatenate %323, %324 in 1 : vector<8x239xf32>, vector<8x17xf32> -> vector<8x256xf32>
      %cst_134 = arith.constant 0.000000e+00 : f32
      %326 = vector.broadcast %cst_134 : f32 to vector<8x256xf32>
      %327 = arith.select %34, %325, %326 : vector<8x256xi1>, vector<8x256xf32>
      %cst_135 = arith.constant dense<0.000000e+00> : vector<8x256xf32>
      %328 = tpu.matmul %322, %327, %cst_135 {dimension_numbers = #tpu.dot_dimension_numbers<[1], [0], [0], [1], [0, 0, 1, 1], [], []>} : vector<8x8xf32>, vector<8x256xf32>, vector<8x256xf32> -> vector<8x256xf32>
      %329 = arith.addf %321, %328 : vector<8x256xf32>
      %330 = arith.index_cast %262 : i32 to index
      %c0_136 = arith.constant 0 : index
      %c0_137 = arith.constant 0 : index
      %331 = vector.load %arg3[%330, %c0_136, %c0_137] : memref<6x8x1xf32, #tpu.memory_space<vmem>>, vector<1x8x1xf32>
      %332 = vector.shape_cast %331 : vector<1x8x1xf32> to vector<8x1xf32>
      %333 = vector.broadcast %332 : vector<8x1xf32> to vector<8x256xf32>
      %334 = arith.addf %329, %333 : vector<8x256xf32>
      %335 = arith.addf %arg6, %334 : vector<8x256xf32>
      scf.yield %335 : vector<8x256xf32>
    }
    %c2_i32_44 = arith.constant 2 : i32
    %c5 = arith.constant 5 : index
    %c0_45 = arith.constant 0 : index
    %c0_46 = arith.constant 0 : index
    %111 = vector.load %arg2[%c5, %c0_45, %c0_46] : memref<6x8x72xf32, #tpu.memory_space<vmem>>, vector<1x8x72xf32>
    %112 = vector.shape_cast %111 : vector<1x8x72xf32> to vector<8x72xf32>
    %cst_47 = arith.constant 0.000000e+00 : f32
    %113 = vector.broadcast %cst_47 : f32 to vector<8x256xf32>
    %114 = vector.extract_strided_slice %112 {offsets = [0, 0], sizes = [8, 8], strides = [1, 1]} : vector<8x72xf32> to vector<8x8xf32>
    %cst_48 = arith.constant 0.000000e+00 : f32
    %115 = vector.broadcast %cst_48 : f32 to vector<8x17xf32>
    %116 = vector.extract_strided_slice %110 {offsets = [0, 0], sizes = [8, 239], strides = [1, 1]} : vector<8x256xf32> to vector<8x239xf32>
    %117 = tpu.concatenate %115, %116 in 1 : vector<8x17xf32>, vector<8x239xf32> -> vector<8x256xf32>
    %cst_49 = arith.constant 0.000000e+00 : f32
    %118 = vector.broadcast %cst_49 : f32 to vector<8x256xf32>
    %119 = arith.select %25, %117, %118 : vector<8x256xi1>, vector<8x256xf32>
    %cst_50 = arith.constant dense<0.000000e+00> : vector<8x256xf32>
    %120 = tpu.matmul %114, %119, %cst_50 {dimension_numbers = #tpu.dot_dimension_numbers<[1], [0], [0], [1], [0, 0, 1, 1], [], []>} : vector<8x8xf32>, vector<8x256xf32>, vector<8x256xf32> -> vector<8x256xf32>
    %121 = arith.addf %113, %120 : vector<8x256xf32>
    %122 = vector.extract_strided_slice %112 {offsets = [0, 8], sizes = [8, 8], strides = [1, 1]} : vector<8x72xf32> to vector<8x8xf32>
    %cst_51 = arith.constant 0.000000e+00 : f32
    %123 = vector.broadcast %cst_51 : f32 to vector<8x16xf32>
    %124 = vector.extract_strided_slice %110 {offsets = [0, 0], sizes = [8, 240], strides = [1, 1]} : vector<8x256xf32> to vector<8x240xf32>
    %125 = tpu.concatenate %123, %124 in 1 : vector<8x16xf32>, vector<8x240xf32> -> vector<8x256xf32>
    %cst_52 = arith.constant dense<0.000000e+00> : vector<8x256xf32>
    %126 = tpu.matmul %122, %125, %cst_52 {dimension_numbers = #tpu.dot_dimension_numbers<[1], [0], [0], [1], [0, 0, 1, 1], [], []>} : vector<8x8xf32>, vector<8x256xf32>, vector<8x256xf32> -> vector<8x256xf32>
    %127 = arith.addf %121, %126 : vector<8x256xf32>
    %128 = vector.extract_strided_slice %112 {offsets = [0, 16], sizes = [8, 8], strides = [1, 1]} : vector<8x72xf32> to vector<8x8xf32>
    %cst_53 = arith.constant 0.000000e+00 : f32
    %129 = vector.broadcast %cst_53 : f32 to vector<8x15xf32>
    %130 = vector.extract_strided_slice %110 {offsets = [0, 0], sizes = [8, 241], strides = [1, 1]} : vector<8x256xf32> to vector<8x241xf32>
    %131 = tpu.concatenate %129, %130 in 1 : vector<8x15xf32>, vector<8x241xf32> -> vector<8x256xf32>
    %cst_54 = arith.constant 0.000000e+00 : f32
    %132 = vector.broadcast %cst_54 : f32 to vector<8x256xf32>
    %133 = arith.select %34, %131, %132 : vector<8x256xi1>, vector<8x256xf32>
    %cst_55 = arith.constant dense<0.000000e+00> : vector<8x256xf32>
    %134 = tpu.matmul %128, %133, %cst_55 {dimension_numbers = #tpu.dot_dimension_numbers<[1], [0], [0], [1], [0, 0, 1, 1], [], []>} : vector<8x8xf32>, vector<8x256xf32>, vector<8x256xf32> -> vector<8x256xf32>
    %135 = arith.addf %127, %134 : vector<8x256xf32>
    %136 = vector.extract_strided_slice %112 {offsets = [0, 24], sizes = [8, 8], strides = [1, 1]} : vector<8x72xf32> to vector<8x8xf32>
    %cst_56 = arith.constant 0.000000e+00 : f32
    %137 = vector.broadcast %cst_56 : f32 to vector<8x1xf32>
    %138 = vector.extract_strided_slice %110 {offsets = [0, 0], sizes = [8, 255], strides = [1, 1]} : vector<8x256xf32> to vector<8x255xf32>
    %139 = tpu.concatenate %137, %138 in 1 : vector<8x1xf32>, vector<8x255xf32> -> vector<8x256xf32>
    %cst_57 = arith.constant 0.000000e+00 : f32
    %140 = vector.broadcast %cst_57 : f32 to vector<8x256xf32>
    %141 = arith.select %25, %139, %140 : vector<8x256xi1>, vector<8x256xf32>
    %cst_58 = arith.constant dense<0.000000e+00> : vector<8x256xf32>
    %142 = tpu.matmul %136, %141, %cst_58 {dimension_numbers = #tpu.dot_dimension_numbers<[1], [0], [0], [1], [0, 0, 1, 1], [], []>} : vector<8x8xf32>, vector<8x256xf32>, vector<8x256xf32> -> vector<8x256xf32>
    %143 = arith.addf %135, %142 : vector<8x256xf32>
    %144 = vector.extract_strided_slice %112 {offsets = [0, 32], sizes = [8, 8], strides = [1, 1]} : vector<8x72xf32> to vector<8x8xf32>
    %cst_59 = arith.constant dense<0.000000e+00> : vector<8x256xf32>
    %145 = tpu.matmul %144, %110, %cst_59 {dimension_numbers = #tpu.dot_dimension_numbers<[1], [0], [0], [1], [0, 0, 1, 1], [], []>} : vector<8x8xf32>, vector<8x256xf32>, vector<8x256xf32> -> vector<8x256xf32>
    %146 = arith.addf %143, %145 : vector<8x256xf32>
    %147 = vector.extract_strided_slice %112 {offsets = [0, 40], sizes = [8, 8], strides = [1, 1]} : vector<8x72xf32> to vector<8x8xf32>
    %148 = vector.extract_strided_slice %110 {offsets = [0, 1], sizes = [8, 255], strides = [1, 1]} : vector<8x256xf32> to vector<8x255xf32>
    %cst_60 = arith.constant 0.000000e+00 : f32
    %149 = vector.broadcast %cst_60 : f32 to vector<8x1xf32>
    %150 = tpu.concatenate %148, %149 in 1 : vector<8x255xf32>, vector<8x1xf32> -> vector<8x256xf32>
    %cst_61 = arith.constant 0.000000e+00 : f32
    %151 = vector.broadcast %cst_61 : f32 to vector<8x256xf32>
    %152 = arith.select %34, %150, %151 : vector<8x256xi1>, vector<8x256xf32>
    %cst_62 = arith.constant dense<0.000000e+00> : vector<8x256xf32>
    %153 = tpu.matmul %147, %152, %cst_62 {dimension_numbers = #tpu.dot_dimension_numbers<[1], [0], [0], [1], [0, 0, 1, 1], [], []>} : vector<8x8xf32>, vector<8x256xf32>, vector<8x256xf32> -> vector<8x256xf32>
    %154 = arith.addf %146, %153 : vector<8x256xf32>
    %155 = vector.extract_strided_slice %112 {offsets = [0, 48], sizes = [8, 8], strides = [1, 1]} : vector<8x72xf32> to vector<8x8xf32>
    %156 = vector.extract_strided_slice %110 {offsets = [0, 15], sizes = [8, 241], strides = [1, 1]} : vector<8x256xf32> to vector<8x241xf32>
    %cst_63 = arith.constant 0.000000e+00 : f32
    %157 = vector.broadcast %cst_63 : f32 to vector<8x15xf32>
    %158 = tpu.concatenate %156, %157 in 1 : vector<8x241xf32>, vector<8x15xf32> -> vector<8x256xf32>
    %cst_64 = arith.constant 0.000000e+00 : f32
    %159 = vector.broadcast %cst_64 : f32 to vector<8x256xf32>
    %160 = arith.select %25, %158, %159 : vector<8x256xi1>, vector<8x256xf32>
    %cst_65 = arith.constant dense<0.000000e+00> : vector<8x256xf32>
    %161 = tpu.matmul %155, %160, %cst_65 {dimension_numbers = #tpu.dot_dimension_numbers<[1], [0], [0], [1], [0, 0, 1, 1], [], []>} : vector<8x8xf32>, vector<8x256xf32>, vector<8x256xf32> -> vector<8x256xf32>
    %162 = arith.addf %154, %161 : vector<8x256xf32>
    %163 = vector.extract_strided_slice %112 {offsets = [0, 56], sizes = [8, 8], strides = [1, 1]} : vector<8x72xf32> to vector<8x8xf32>
    %164 = vector.extract_strided_slice %110 {offsets = [0, 16], sizes = [8, 240], strides = [1, 1]} : vector<8x256xf32> to vector<8x240xf32>
    %cst_66 = arith.constant 0.000000e+00 : f32
    %165 = vector.broadcast %cst_66 : f32 to vector<8x16xf32>
    %166 = tpu.concatenate %164, %165 in 1 : vector<8x240xf32>, vector<8x16xf32> -> vector<8x256xf32>
    %cst_67 = arith.constant dense<0.000000e+00> : vector<8x256xf32>
    %167 = tpu.matmul %163, %166, %cst_67 {dimension_numbers = #tpu.dot_dimension_numbers<[1], [0], [0], [1], [0, 0, 1, 1], [], []>} : vector<8x8xf32>, vector<8x256xf32>, vector<8x256xf32> -> vector<8x256xf32>
    %168 = arith.addf %162, %167 : vector<8x256xf32>
    %169 = vector.extract_strided_slice %112 {offsets = [0, 64], sizes = [8, 8], strides = [1, 1]} : vector<8x72xf32> to vector<8x8xf32>
    %170 = vector.extract_strided_slice %110 {offsets = [0, 17], sizes = [8, 239], strides = [1, 1]} : vector<8x256xf32> to vector<8x239xf32>
    %cst_68 = arith.constant 0.000000e+00 : f32
    %171 = vector.broadcast %cst_68 : f32 to vector<8x17xf32>
    %172 = tpu.concatenate %170, %171 in 1 : vector<8x239xf32>, vector<8x17xf32> -> vector<8x256xf32>
    %cst_69 = arith.constant 0.000000e+00 : f32
    %173 = vector.broadcast %cst_69 : f32 to vector<8x256xf32>
    %174 = arith.select %34, %172, %173 : vector<8x256xi1>, vector<8x256xf32>
    %cst_70 = arith.constant dense<0.000000e+00> : vector<8x256xf32>
    %175 = tpu.matmul %169, %174, %cst_70 {dimension_numbers = #tpu.dot_dimension_numbers<[1], [0], [0], [1], [0, 0, 1, 1], [], []>} : vector<8x8xf32>, vector<8x256xf32>, vector<8x256xf32> -> vector<8x256xf32>
    %176 = arith.addf %168, %175 : vector<8x256xf32>
    %c5_71 = arith.constant 5 : index
    %c0_72 = arith.constant 0 : index
    %c0_73 = arith.constant 0 : index
    %177 = vector.load %arg3[%c5_71, %c0_72, %c0_73] : memref<6x8x1xf32, #tpu.memory_space<vmem>>, vector<1x8x1xf32>
    %178 = vector.shape_cast %177 : vector<1x8x1xf32> to vector<8x1xf32>
    %179 = vector.broadcast %178 : vector<8x1xf32> to vector<8x256xf32>
    %180 = arith.addf %176, %179 : vector<8x256xf32>
    %181 = vector.extract_strided_slice %180 {offsets = [0, 0], sizes = [1, 256], strides = [1, 1]} : vector<8x256xf32> to vector<1x256xf32>
    %c0_74 = arith.constant 0 : index
    %c0_75 = arith.constant 0 : index
    %c0_76 = arith.constant 0 : index
    %182 = vector.load %arg4[%c0_74, %c0_75, %c0_76] : memref<1x1x256xf32, #tpu.memory_space<vmem>>, vector<1x1x256xf32>
    %183 = vector.shape_cast %182 : vector<1x1x256xf32> to vector<1x256xf32>
    %184 = vector.shape_cast %181 : vector<1x256xf32> to vector<1x1x256xf32>
    tpu.vector_store %arg4[%c0_74, %c0_75, %c0_76], %184 {strides = array<i32>} : memref<1x1x256xf32, #tpu.memory_space<vmem>>, vector<1x1x256xf32>,
    return
  }
  func.func @transform_0(%arg0: i32) -> (i32, i32, i32) {
    %c0_i32 = arith.constant 0 : i32
    %c0_i32_0 = arith.constant 0 : i32
    %c0_i32_1 = arith.constant 0 : i32
    return %arg0, %c0_i32, %c0_i32_0 : i32, i32, i32
  }
  func.func @transform_1(%arg0: i32) -> (i32, i32, i32) {
    %c0_i32 = arith.constant 0 : i32
    %c0_i32_0 = arith.constant 0 : i32
    %c0_i32_1 = arith.constant 0 : i32
    %c0_i32_2 = arith.constant 0 : i32
    return %c0_i32, %c0_i32_0, %c0_i32_1 : i32, i32, i32
  }
  func.func @transform_2(%arg0: i32) -> (i32, i32, i32) {
    %c0_i32 = arith.constant 0 : i32
    %c0_i32_0 = arith.constant 0 : i32
    %c0_i32_1 = arith.constant 0 : i32
    %c0_i32_2 = arith.constant 0 : i32
    return %c0_i32, %c0_i32_0, %c0_i32_1 : i32, i32, i32
  }
  func.func @transform_3(%arg0: i32) -> (i32, i32, i32) {
    %c0_i32 = arith.constant 0 : i32
    %c0_i32_0 = arith.constant 0 : i32
    %c0_i32_1 = arith.constant 0 : i32
    return %arg0, %c0_i32, %c0_i32_0 : i32, i32, i32
  }
}

</mosaic_0001>

<bundles_post_ra>
// kernel: tpu_custom_call.1
= control target key start
LH: loop header
LB: loop body
LE: loop exit
PB: predicated region body
PF: predicated region fallthrough
CT: control target
= control target key end

     0   :  { %8 = vsyncpa [#allocation3], 0  ;;  %s4493_s0 = inlined_call_operand.vmem [shape: f32[2,1,256], index: 0, kind: input, shape index: {}]   ;;  %s4494_s1 = inlined_call_operand.vmem [shape: f32[6,8,72], index: 1, kind: input, shape index: {}]   ;;  %s4495_s2 = inlined_call_operand.vmem [shape: f32[6,8,1], index: 2, kind: input, shape index: {}]   ;;  %s4496_s3 = inlined_call_operand.hbm [shape: f32[2,1,256], index: 3, kind: output, shape index: {}]  }
   0x1   :  { %10 = vsyncpa [#allocation3 + $0x1], 0  ;;  %s3917_s12 = smov 0   ;;  %s3919_s13 = smov 0  }
   0x2   :  { %s3921_s14 = smov 0   ;;  %s3923_s15 = smov 0  }
   0x3 LB: > { %s3938_s16 = sadd.s32 4294967295, %s3847_s15   ;;  %s3480_s17 = sadd.s32 4294967294, %s3847_s15   ;;  %s3847_s15 = sphi %s3923_s15, %s4557_s15   ;;  %s3843_s14 = sphi %s3921_s14, %s4556_s14   ;;  %s3839_s13 = sphi %s3919_s13, %s4555_s13   ;;  %s3835_s12 = sphi %s3917_s12, %s4554_s12  }
   0x4   : > { %s3942_s18 = sadd.s32 1, %s3847_s15   ;;  %s91_s19 = sadd.s32 1, %s3843_s14 }
   0x5   : > { %s88_s20 = ssub.s32 %s3847_s15, %s3942_s18  ;;  %p101_p0 = scmp.ne.s32.totalorder %s3843_s14, %s3839_s13 }
   0x6   : > { %p89_p1 = scmp.eq.s32.totalorder %s88_s20, 0  ;;  %p102_p2 = scmp.eq.s32.totalorder %s3938_s16, 1 }
   0x7   : > { %p107_p3 = scmp.ne.s32.totalorder %s3839_s13, %s3835_s12  ;;  %p108_p4 = scmp.eq.s32.totalorder %s3480_s17, 1 }
   0x8   : > { %s3953_s21 = scalar_select %p89_p1, %s3843_s14, %s91_s19  }
   0x9   : > { %p3955_p5 = por %p102_p2, %p101_p0  ;;  %p3959_p6 = por %p108_p4, %p107_p3 }
   0xa   : > { %p3483_p7 = scmp.ge.s32.totalorder %s3847_s15, 1  ;;  %p139_p8 = scmp.lt.s32.totalorder %s3847_s15, 3 }
   0xc   : > { %p140_p9 = pnand %p3483_p7, %p139_p8 }
   0xd   : > { %v3968_v0 = vld [vmem:[%s4494_s1] sm:$0xff] (!%p140_p9)  ;;  %v166_v1 = vlaneseq (!%p140_p9)  ;;  %s4515_s26 = smov (!%p140_p9), 120   ;;  %s4518_s27 = smov (!%p140_p9), 96   ;;  %v3863_v3 = vmov (!%p140_p9), 0.0   ;;  %vm221_vm0 = vcmask (!%p140_p9), 1040384   ;;  %v3873_v11 = vmov (!%p140_p9), 0  }
   0xe   : > { %143 = sbr.rel (%p140_p9) target bundleno = 1603 (0x643), region = 32  ;;  %248 = vrot.lane.b32.xlu1 (!%p140_p9), %v3968_v0, %s4515_s26  ;;  %573 = vrot.lane.b32.xlu0 (!%p140_p9), %v3968_v0, %s4518_s27  ;;  %p162_p10 = scmp.lt.s32.totalorder (!%p140_p9), %s3938_s16, 1  ;;  %v1000_v12 = vld [vmem:[%s4495_s2] sm:$0xff] (!%p140_p9)  ;;  %vm250_vm1 = vcmask (!%p140_p9), 64512   ;;  %vm242_vm2 = vcmask (!%p140_p9), 130048   ;;  %vm654_vm4 = vcmask (!%p140_p9), 1039360  }
   0xf   : > { %v3976_v2 = vshrl.u32 (!%p140_p9), %v166_v1, 7  ;;  %641 = vmatprep.mubr.f32.mxu0 (!%p140_p9), %v3863_v3  ;;  %317 = vmatprep.mubr.f32.mxu1 (!%p140_p9), %v3863_v3  ;;  %s4497_s6 = sand.u32 (!%p140_p9), 1, %s3839_s13   ;;  %s4519_s7 = smov (!%p140_p9), 16   ;;  %v167_v13 = vand.u32 (!%p140_p9), 127, %v166_v1  ;;  %vm4029_vm3 = vmneg (!%p140_p9), %vm242_vm2  ;;  %vm742_vm7 = vcmask (!%p140_p9), 924672   ;;  %vm231_vm8 = vcmask (!%p140_p9), 138240  }
  0x10   : > { %s3991_s8 = sshll.u32 (!%p140_p9), %s4497_s6, 1  ;;  %s4516_s9 = smov (!%p140_p9), 127   ;;  %3770 = vset.pattern.permute.xlu0 (!%p140_p9), %v3873_v11  ;;  %vm401_vm11 = vcmask (!%p140_p9), 121856   ;;  %vm830_vm12 = vcmask (!%p140_p9), 916480   ;;  %vm489_vm13 = vcmask (!%p140_p9), 7168   ;;  %vm916_vm14 = vcmask (!%p140_p9), 908288  }
  0x11   : > { %v217_v4 = vsub.s32 (!%p140_p9), 1, %v3976_v2  ;;  %v213_v5 = vsub.s32 (!%p140_p9), 0, %v3976_v2  ;;  %s4513_s10 = smov (!%p140_p9), 17   ;;  %s4512_s11 = smov (!%p140_p9), 88   ;;  %v168_v15 = vadd.s32 (!%p140_p9), 128, %v167_v13  ;;  %v173_v18 = vand.u32 (!%p140_p9), 15, %v167_v13 }
  0x12   : > { %s4510_s17 = smov (!%p140_p9), 113   ;;  %s4509_s19 = smov (!%p140_p9), 80  }
  0x13   : > { %s4507_s20 = smov (!%p140_p9), 15   ;;  %s4505_s24 = smov (!%p140_p9), 112   ;;  %v180_v17 = vand.u32 (!%p140_p9), 15, %v168_v15  ;;  %v4033_v23 = vadd.s32 (!%p140_p9), 1, %v173_v18  ;;  %v4050_v32 = vadd.s32 (!%p140_p9), 4294967295, %v173_v18 }
  0x14   : > { %s4504_s25 = smov (!%p140_p9), 72   ;;  %s4499_s30 = smov (!%p140_p9), 64  }
  0x15   : > { %s163_s28 = scalar_select %p162_p10, %s3938_s16, 1  ;;  %v4026_v19 = vadd.s32 1, %v180_v17  ;;  %vm205_vm6 = vcmp.lt.s32.totalorder %v4033_v23, 16  ;;  %v4048_v29 = vadd.s32 4294967295, %v180_v17  ;;  %vm195_vm10 = vcmp.ge.s32.totalorder %v4050_v32, 0 }
  0x16   : > { %s4498_s4 = smov 104  }
  0x17   : > { %s3485_s29 = sshll.u32 %s163_s28, 1  ;;  %s4502_s28 = smov 1   ;;  %vm206_vm5 = vcmp.lt.s32.totalorder %v4026_v19, 16  ;;  %vm196_vm9 = vcmp.ge.s32.totalorder %v4048_v29, 0 }
  0x18   : > { %s165_s5 = scalar_lea.vmem %s4493_s0, %s3485_s29  ;;  %s4500_s29 = smov 111  }
  0x19   : > { %v209_v6 = vld [vmem:[%s165_s5] sm:$0x3]  ;;  %s4104_s5 = smov 0  }
  0x1a   : > { %v218_v7 = vrot.slane %v209_v6, %v217_v4  ;;  %v214_v8 = vrot.slane %v209_v6, %v213_v5 }
  0x1c   : > { %v223_v9 = vsel %vm221_vm0, %v218_v7, 0.0  ;;  %v222_v10 = vsel %vm221_vm0, %v214_v8, 0.0  ;;  %3498 = vmatprep.subr.msk.mxu0 %vm221_vm0, %v218_v7 }
  0x1d   : > { %240 = vrot.lane.b32.xlu1 %v223_v9, %s4519_s7  ;;  %238 = vrot.lane.b32.xlu0 %v222_v10, %s4519_s7 }
  0x1e   : > { %3499 = vmatpush1.msk.msra.mxu0 %vm221_vm0, %v214_v8 }
  0x21   : > { %652 = vrot.lane.b32.xlu1 %v223_v9, %s4516_s9  ;;  %650 = vrot.lane.b32.xlu0 %v222_v10, %s4516_s9 }
  0x25   : > { %227 = vrot.lane.b32.xlu1 %v222_v10, %s4513_s10  ;;  %661 = vrot.lane.b32.xlu0 %v3968_v0, %s4512_s11 }
  0x29   : > { %740 = vrot.lane.b32.xlu1 %v223_v9, %s4510_s17  ;;  %229 = vrot.lane.b32.xlu0 %v223_v9, %s4513_s10 }
  0x2d   : > { %749 = vrot.lane.b32.xlu1 %v3968_v0, %s4509_s19  ;;  %738 = vrot.lane.b32.xlu0 %v222_v10, %s4510_s17 }
  0x31   : > { %399 = vrot.lane.b32.xlu1 %v223_v9, %s4507_s20  ;;  %397 = vrot.lane.b32.xlu0 %v222_v10, %s4507_s20 }
  0x35   : > { %828 = vrot.lane.b32.xlu1 %v223_v9, %s4505_s24  ;;  %826 = vrot.lane.b32.xlu0 %v222_v10, %s4505_s24 }
  0x39   : > { %835 = vrot.lane.b32.xlu1 %v3968_v0, %s4504_s25  ;;  %408 = vrot.lane.b32.xlu0 %v3968_v0, %s4505_s24 }
  0x3d   : > { %487 = vrot.lane.b32.xlu1 %v223_v9, %s4502_s28  ;;  %485 = vrot.lane.b32.xlu0 %v222_v10, %s4502_s28 }
  0x41   : > { %912 = vrot.lane.b32.xlu1 %v222_v10, %s4500_s29  ;;  %914 = vrot.lane.b32.xlu0 %v223_v9, %s4500_s29 }
  0x45   : > { %923 = vrot.lane.b32.xlu1 %v3968_v0, %s4499_s30  ;;  %496 = vrot.lane.b32.xlu0 %v3968_v0, %s4498_s4 }
  0x49   : > { %1003 = vperm.xlu0 %3770, %v1000_v12  }
  0x80   : > { %v574_v14 = vpop.permute.xlu0 %573  ;;  %v249_v16 = vpop.permute.xlu1 %248 }
  0x81   : > { %3500 = vmatmul.mubr.msk.f32.vlgmr.msra.gmra.mrb[0].mxu0 %vm250_vm1, %v574_v14 }
  0x82   : > { %729 = vmatprep.mubr.f32.mxu0 %v3863_v3 }
  0x8f   : > { %v241_v20 = vpop.permute.xlu1 %240  ;;  %v239_v21 = vpop.permute.xlu0 %238 }
  0x90   : > { %v243_v24 = vsel %vm242_vm2, %v239_v21, %v241_v20 }
  0x91   : > { %253 = vmatprep.subr.mxu1 %v243_v24 }
  0x92   : > { %3487 = vmatpush1.msk.msra.mxu1 %vm4029_vm3, %v239_v21 }
  0x93   : > { %v653_v25 = vpop.permute.xlu1 %652  ;;  %3488 = vmatmul.mubr.msk.f32.vlgmr.msra.gmra.mrb[0].mxu1 %vm250_vm1, %v249_v16  ;;  %v651_v26 = vpop.permute.xlu0 %650 }
  0x94   : > { %v658_v27 = vsel %vm654_vm4, %v653_v25, 0.0  ;;  %v655_v28 = vsel %vm654_vm4, %v651_v26, %v653_v25  ;;  %390 = vmatprep.mubr.f32.mxu1 %v3863_v3 }
  0x95   : > { %3501 = vmatprep.subr.msk.mxu0 %vm206_vm5, %v658_v27 }
  0x96   : > { %3502 = vmatpush1.msk.msra.mxu0 %vm205_vm6, %v655_v28 }
  0x97   : > { %v228_v30 = vpop.permute.xlu1 %227  ;;  %v662_v31 = vpop.permute.xlu0 %661 }
  0x98   : > { %3503 = vmatmul.mubr.msk.f32.vlgmr.msra.gmra.mrb[0].mxu0 %vm250_vm1, %v662_v31  ;;  %v235_v37 = vsel %vm231_vm8, 0.0, %v228_v30 }
  0x99   : > { %817 = vmatprep.mubr.f32.mxu0 %v3863_v3 }
  0x9b   : > { %v741_v33 = vpop.permute.xlu1 %740  ;;  %v230_v34 = vpop.permute.xlu0 %229 }
  0x9c   : > { %v746_v35 = vsel %vm742_vm7, %v741_v33, 0.0  ;;  %v232_v36 = vsel %vm231_vm8, %v228_v30, %v230_v34 }
  0x9d   : > { %3489 = vmatprep.subr.msk.mxu1 %vm196_vm9, %v232_v36  ;;  %3504 = vmatprep.subr.msk.mxu0 %vm196_vm9, %v746_v35 }
  0x9e   : > { %3490 = vmatpush1.msk.msra.mxu1 %vm195_vm10, %v235_v37 }
  0x9f   : > { %v750_v38 = vpop.permute.xlu1 %749  ;;  %v739_v39 = vpop.permute.xlu0 %738  ;;  %3491 = vmatmul.mubr.msk.f32.vlgmr.msra.gmra.mrb[0].mxu1 %vm250_vm1, %v3968_v0 }
  0xa0   : > { %v743_v40 = vsel %vm742_vm7, %v739_v39, %v741_v33  ;;  %476 = vmatprep.mubr.f32.mxu1 %v3863_v3 }
  0xa1   : > { %3505 = vmatpush1.msk.msra.mxu0 %vm195_vm10, %v743_v40 }
  0xa2   : > { %3506 = vmatmul.mubr.msk.f32.vlgmr.msra.gmra.mrb[0].mxu0 %vm250_vm1, %v750_v38 }
  0xa3   : > { %v400_v41 = vpop.permute.xlu1 %399  ;;  %v398_v42 = vpop.permute.xlu0 %397  ;;  %903 = vmatprep.mubr.f32.mxu0 %v3863_v3 }
  0xa4   : > { %v402_v43 = vsel %vm401_vm11, %v398_v42, %v400_v41  ;;  %v405_v44 = vsel %vm401_vm11, 0.0, %v398_v42 }
  0xa5   : > { %3492 = vmatprep.subr.msk.mxu1 %vm206_vm5, %v402_v43 }
  0xa6   : > { %3493 = vmatpush1.msk.msra.mxu1 %vm205_vm6, %v405_v44 }
  0xa7   : > { %v829_v45 = vpop.permute.xlu1 %828  ;;  %v827_v46 = vpop.permute.xlu0 %826 }
  0xa8   : > { %v831_v47 = vsel %vm830_vm12, %v827_v46, %v829_v45  ;;  %3507 = vmatprep.subr.msk.mxu0 %vm830_vm12, %v829_v45 }
  0xa9   : > { %840 = vmatpush1.msra.mxu0 %v831_v47 }
  0xab   : > { %v836_v48 = vpop.permute.xlu1 %835  ;;  %v409_v49 = vpop.permute.xlu0 %408 }
  0xac   : > { %3494 = vmatmul.mubr.msk.f32.vlgmr.msra.gmra.mrb[0].mxu1 %vm250_vm1, %v409_v49  ;;  %3508 = vmatmul.mubr.msk.f32.vlgmr.msra.gmra.mrb[0].mxu0 %vm250_vm1, %v836_v48 }
  0xad   : > { %564 = vmatprep.mubr.f32.mxu1 %v3863_v3  ;;  %991 = vmatprep.mubr.f32.mxu0 %v3863_v3 }
  0xaf   : > { %v488_v50 = vpop.permute.xlu1 %487  ;;  %v486_v51 = vpop.permute.xlu0 %485 }
  0xb0   : > { %v490_v52 = vsel %vm489_vm13, %v486_v51, %v488_v50  ;;  %v493_v53 = vsel %vm489_vm13, 0.0, %v486_v51 }
  0xb1   : > { %3495 = vmatprep.subr.msk.mxu1 %vm196_vm9, %v490_v52 }
  0xb2   : > { %3496 = vmatpush1.msk.msra.mxu1 %vm195_vm10, %v493_v53 }
  0xb3   : > { %v913_v54 = vpop.permute.xlu1 %912  ;;  %v915_v55 = vpop.permute.xlu0 %914 }
  0xb4   : > { %v917_v56 = vsel %vm916_vm14, %v913_v54, %v915_v55  ;;  %v920_v57 = vsel %vm916_vm14, %v915_v55, 0.0 }
  0xb5   : > { %3509 = vmatprep.subr.msk.mxu0 %vm206_vm5, %v920_v57 }
  0xb6   : > { %3510 = vmatpush1.msk.msra.mxu0 %vm205_vm6, %v917_v56 }
  0xb7   : > { %v924_v58 = vpop.permute.xlu1 %923  ;;  %v497_v59 = vpop.permute.xlu0 %496 }
  0xb8   : > { %3497 = vmatmul.mubr.msk.f32.vlgmr.msra.gmra.mrb[0].mxu1 %vm250_vm1, %v497_v59  ;;  %3511 = vmatmul.mubr.msk.f32.vlgmr.msra.gmra.mrb[0].mxu0 %vm250_vm1, %v924_v58 }
  0xc8   : > { %v1004_v60 = vpop.permute.xlu0 %1003 }
 0x18b   : > { %v566_v61 = vpop.f32.mrb[0].mxu1  ;;  %v993_v62 = vpop.f32.mrb[0].mxu0 }
 0x18c   : > { %v3608_v63 = vadd.f32 %v993_v62, %v566_v61  ;;  %v568_v0 = vpop.f32.mrb[1].mxu1  ;;  %v995_v4 = vpop.f32.mrb[1].mxu0 }
 0x18d   : > { %v3609_v5 = vadd.f32 %v995_v4, %v568_v0 }
 0x18e   : > { %v1006_v6 = vadd.f32 %v3608_v63, %v1004_v60  }
 0x18f   : > { %v1007_v7 = vadd.f32 %v3609_v5, %v1004_v60  }
 0x190 LB: >> { %v3878_v8 = vmov 0.0   ;;  %s3879_s6 = smov 16   ;;  %s3603_s4 = sshll.u32 %s3859_s5, 4  ;;  %v3894_v10 = vmov 0   ;;  %s3859_s5 = sphi %s4104_s5, %s1013_s5   ;;  %v3855_v6 = vphi %v1006_v6, %v4535_v6   ;;  %v3851_v7 = vphi %v1007_v7, %v4534_v7  }
 0x191   : >> { %1110 = vmatprep.mubr.f32.mxu0 %v3878_v8  ;;  %1891 = vmatprep.mubr.f32.mxu1 %v3878_v8  ;;  %s4125_s28 = scalar_lea.vmem %s4494_s1, %s3603_s4  ;;  %s3880_s25 = smov 120  }
 0x192   : >> { %1033 = vrot.lane.b32.xlu0 %v3855_v6, %s3879_s6  ;;  %v4128_v9 = vld [vmem:[%s4125_s28 + $0x8] sm:$0xff]  ;;  %s3881_s24 = smov 17   ;;  %s3882_s29 = smov 15   ;;  %v3544_v56 = vld [vmem:[%s4125_s28 + $0x10] sm:$0xff] }
 0x193   : >> { %1042 = vrot.lane.b32.xlu1 %v4128_v9, %s3880_s25  ;;  %s3883_s30 = smov 112   ;;  %s3884_s20 = smov 1   ;;  %3771 = vset.pattern.permute.xlu0 %v3894_v10 }
 0x194   : >> { %s3885_s19 = smov 104   ;;  %s4524_s17 = smov 96  }
 0x195   : >> { %s3887_s11 = smov 127   ;;  %s4525_s10 = smov 88  }
 0x196   : >> { %1035 = vrot.lane.b32.xlu0 %v3851_v7, %s3879_s6  ;;  %s4521_s26 = smov 113   ;;  %s4523_s9 = smov 80  }
 0x197   : >> { %1023 = vrot.lane.b32.xlu1 %v3855_v6, %s3881_s24  ;;  %s3891_s27 = smov 72   ;;  %s3892_s7 = smov 111  }
 0x198   : >> { %s1013_s5 = sadd.s32 1, %s3859_s5  }
 0x199   : >> { %p1010_p11 = scmp.ge.s32.totalorder %s1013_s5, 2  }
 0x19a   : >> { %1025 = vrot.lane.b32.xlu0 %v3851_v7, %s3881_s24  ;;  %s4541_s28 = smov (%p1010_p11), 88   ;;  %s4544_s5 = smov (%p1010_p11), 15   ;;  %v3895_v32 = vmov (%p1010_p11), 1966171168   ;;  %vm3376_vm15 = vcmp.lt.s32.totalorder (%p1010_p11), %v166_v1, 256 }
 0x19b   : >> { %1190 = vrot.lane.b32.xlu1 %v3855_v6, %s3882_s29 }
 0x19e   : >> { %1192 = vrot.lane.b32.xlu0 %v3851_v7, %s3882_s29 }
 0x19f   : >> { %1200 = vrot.lane.b32.xlu1 %v4128_v9, %s3883_s30 }
 0x1a2   : >> { %1277 = vrot.lane.b32.xlu0 %v3855_v6, %s3884_s20 }
 0x1a3   : >> { %1279 = vrot.lane.b32.xlu1 %v3851_v7, %s3884_s20 }
 0x1a6   : >> { %1287 = vrot.lane.b32.xlu0 %v4128_v9, %s3885_s19 }
 0x1a7   : >> { %1364 = vrot.lane.b32.xlu1 %v4128_v9, %s4524_s17  ;;  %s4531_s17 = smov 96  }
 0x1aa   : >> { %1443 = vrot.lane.b32.xlu0 %v3851_v7, %s3887_s11 }
 0x1ab   : >> { %1441 = vrot.lane.b32.xlu1 %v3855_v6, %s3887_s11 }
 0x1ae   : >> { %1451 = vrot.lane.b32.xlu0 %v4128_v9, %s4525_s10  ;;  %s4181_s10 = scalar_lea.vmem %s4495_s2, %s3603_s4  ;;  %s4542_s4 = smov (%p1010_p11), 113  }
 0x1af   : >> { %1530 = vrot.lane.b32.xlu1 %v3851_v7, %s4521_s26  ;;  %v3541_v12 = vld [vmem:[%s4181_s10 + $0x8] sm:$0xff]  ;;  %v3571_v0 = vld [vmem:[%s4181_s10 + $0x10] sm:$0xff]  ;;  %s4537_s10 = smov (%p1010_p11), 96  }
 0x1b2   : >> { %1528 = vrot.lane.b32.xlu0 %v3855_v6, %s4521_s26  ;;  %s3893_s26 = smov 64  }
 0x1b3   : >> { %1538 = vrot.lane.b32.xlu1 %v4128_v9, %s4523_s9  ;;  %s4530_s9 = smov 88  }
 0x1b6   : >> { %1615 = vrot.lane.b32.xlu0 %v3855_v6, %s3883_s30 }
 0x1b7   : >> { %1617 = vrot.lane.b32.xlu1 %v3851_v7, %s3883_s30 }
 0x1ba   : >> { %1623 = vrot.lane.b32.xlu0 %v4128_v9, %s3891_s27 }
 0x1bb   : >> { %1702 = vrot.lane.b32.xlu1 %v3851_v7, %s3892_s7 }
 0x1be   : >> { %1700 = vrot.lane.b32.xlu0 %v3855_v6, %s3892_s7 }
 0x1bf   : >> { %1710 = vrot.lane.b32.xlu1 %v4128_v9, %s3893_s26 }
 0x1c2   : >> { %1791 = vperm.xlu0 %3771, %v3541_v12  }
 0x1c6   : >> { %1823 = vrot.lane.b32.xlu0 %v3544_v56, %s3880_s25  ;;  %s4540_s25 = smov (%p1010_p11), 17  }
 0x204   : >> { %v1034_v13 = vpop.permute.xlu0 %1033 }
 0x205   : >> { %v1043_v14 = vpop.permute.xlu1 %1042 }
 0x208   : >> { %v1036_v15 = vpop.permute.xlu0 %1035 }
 0x209   : >> { %v1037_v16 = vsel %vm242_vm2, %v1034_v13, %v1036_v15  ;;  %v1024_v17 = vpop.permute.xlu1 %1023 }
 0x20a   : >> { %1046 = vmatprep.subr.mxu0 %v1037_v16  ;;  %v1030_v18 = vsel %vm231_vm8, 0.0, %v1024_v17 }
 0x20b   : >> { %3516 = vmatpush1.msk.msra.mxu0 %vm4029_vm3, %v1034_v13 }
 0x20c   : >> { %3517 = vmatmul.mubr.msk.f32.vlgmr.msra.gmra.mrb[0].mxu0 %vm250_vm1, %v1043_v14  ;;  %v1026_v20 = vpop.permute.xlu0 %1025 }
 0x20d   : >> { %v1027_v21 = vsel %vm231_vm8, %v1024_v17, %v1026_v20  ;;  %1183 = vmatprep.mubr.f32.mxu0 %v3878_v8  ;;  %v1191_v24 = vpop.permute.xlu1 %1190 }
 0x20e   : >> { %3518 = vmatprep.subr.msk.mxu0 %vm196_vm9, %v1027_v21  ;;  %v1197_v27 = vsel %vm401_vm11, 0.0, %v1191_v24 }
 0x20f   : >> { %3519 = vmatpush1.msk.msra.mxu0 %vm195_vm10, %v1030_v18 }
 0x210   : >> { %v1193_v25 = vpop.permute.xlu0 %1192 }
 0x211   : >> { %v1194_v26 = vsel %vm401_vm11, %v1191_v24, %v1193_v25  ;;  %v1201_v28 = vpop.permute.xlu1 %1200 }
 0x212   : >> { %3521 = vmatprep.subr.msk.mxu0 %vm206_vm5, %v1194_v26 }
 0x214   : >> { %3520 = vmatmul.mubr.msk.f32.vlgmr.msra.gmra.mrb[0].mxu0 %vm250_vm1, %v4128_v9  ;;  %v1278_v30 = vpop.permute.xlu0 %1277 }
 0x215   : >> { %3522 = vmatpush1.msk.msra.mxu0 %vm205_vm6, %v1197_v27  ;;  %1268 = vmatprep.mubr.f32.mxu0 %v3878_v8  ;;  %v1280_v31 = vpop.permute.xlu1 %1279  ;;  %v1284_v34 = vsel %vm489_vm13, 0.0, %v1278_v30 }
 0x216   : >> { %v1281_v33 = vsel %vm489_vm13, %v1278_v30, %v1280_v31 }
 0x217   : >> { %3524 = vmatprep.subr.msk.mxu0 %vm196_vm9, %v1281_v33 }
 0x218   : >> { %v1288_v35 = vpop.permute.xlu0 %1287 }
 0x219   : >> { %v1365_v36 = vpop.permute.xlu1 %1364 }
 0x21c   : >> { %3523 = vmatmul.mubr.msk.f32.vlgmr.msra.gmra.mrb[0].mxu0 %vm250_vm1, %v1201_v28  ;;  %v1444_v37 = vpop.permute.xlu0 %1443 }
 0x21d   : >> { %3525 = vmatpush1.msk.msra.mxu0 %vm195_vm10, %v1284_v34  ;;  %1355 = vmatprep.mubr.f32.mxu0 %v3878_v8  ;;  %v1442_v38 = vpop.permute.xlu1 %1441  ;;  %v1448_v39 = vsel %vm654_vm4, %v1444_v37, 0.0 }
 0x21e   : >> { %1368 = vmatprep.subr.mxu0 %v3851_v7  ;;  %v1445_v42 = vsel %vm654_vm4, %v1442_v38, %v1444_v37 }
 0x220   : >> { %v1452_v41 = vpop.permute.xlu0 %1451 }
 0x221   : >> { %v1531_v40 = vpop.permute.xlu1 %1530 }
 0x222   : >> { %v1535_v43 = vsel %vm742_vm7, %v1531_v40, 0.0 }
 0x224   : >> { %3526 = vmatmul.mubr.msk.f32.vlgmr.msra.gmra.mrb[0].mxu0 %vm250_vm1, %v1288_v35  ;;  %v1529_v45 = vpop.permute.xlu0 %1528 }
 0x225   : >> { %1369 = vmatpush1.msra.mxu0 %v3855_v6  ;;  %1432 = vmatprep.mubr.f32.mxu0 %v3878_v8  ;;  %v1539_v44 = vpop.permute.xlu1 %1538  ;;  %v1532_v46 = vsel %vm742_vm7, %v1529_v45, %v1531_v40 }
 0x226   : >> { %3528 = vmatprep.subr.msk.mxu0 %vm206_vm5, %v1448_v39 }
 0x228   : >> { %v1616_v47 = vpop.permute.xlu0 %1615 }
 0x229   : >> { %v1618_v48 = vpop.permute.xlu1 %1617 }
 0x22a   : >> { %v1619_v51 = vsel %vm830_vm12, %v1616_v47, %v1618_v48 }
 0x22c   : >> { %3527 = vmatmul.mubr.msk.f32.vlgmr.msra.gmra.mrb[0].mxu0 %vm250_vm1, %v1365_v36  ;;  %v1624_v50 = vpop.permute.xlu0 %1623 }
 0x22d   : >> { %3529 = vmatpush1.msk.msra.mxu0 %vm205_vm6, %v1445_v42  ;;  %1519 = vmatprep.mubr.f32.mxu0 %v3878_v8  ;;  %v1703_v49 = vpop.permute.xlu1 %1702 }
 0x22e   : >> { %3531 = vmatprep.subr.msk.mxu0 %vm196_vm9, %v1535_v43  ;;  %v1707_v52 = vsel %vm916_vm14, %v1703_v49, 0.0 }
 0x230   : >> { %v1701_v53 = vpop.permute.xlu0 %1700 }
 0x231   : >> { %v1704_v54 = vsel %vm916_vm14, %v1701_v53, %v1703_v49  ;;  %v1711_v55 = vpop.permute.xlu1 %1710 }
 0x234   : >> { %3530 = vmatmul.mubr.msk.f32.vlgmr.msra.gmra.mrb[0].mxu0 %vm250_vm1, %v1452_v41 }
 0x235   : >> { %3532 = vmatpush1.msk.msra.mxu0 %vm195_vm10, %v1532_v46  ;;  %1606 = vmatprep.mubr.f32.mxu0 %v3878_v8 }
 0x236   : >> { %3534 = vmatprep.subr.msk.mxu0 %vm830_vm12, %v1618_v48 }
 0x23c   : >> { %3533 = vmatmul.mubr.msk.f32.vlgmr.msra.gmra.mrb[0].mxu0 %vm250_vm1, %v1539_v44 }
 0x23d   : >> { %1628 = vmatpush1.msra.mxu0 %v1619_v51  ;;  %1691 = vmatprep.mubr.f32.mxu0 %v3878_v8 }
 0x23e   : >> { %3536 = vmatprep.subr.msk.mxu0 %vm206_vm5, %v1707_v52 }
 0x241   : >> { %v1792_v57 = vpop.permute.xlu0 %1791 }
 0x244   : >> { %3535 = vmatmul.mubr.msk.f32.vlgmr.msra.gmra.mrb[0].mxu0 %vm250_vm1, %v1624_v50 }
 0x245   : >> { %3537 = vmatpush1.msk.msra.mxu0 %vm205_vm6, %v1704_v54  ;;  %1778 = vmatprep.mubr.f32.mxu0 %v3878_v8  ;;  %v1824_v4 = vpop.permute.xlu0 %1823 }
 0x24c   : >> { %3538 = vmatmul.mubr.msk.f32.vlgmr.msra.gmra.mrb[0].mxu0 %vm250_vm1, %v1711_v55 }
 0x24d   : > { %2992 = vmatprep.mubr.f32.mxu0 (%p1010_p11), %v3863_v3 }
 0x31f   : >> { %v1780_v58 = vpop.f32.mrb[0].mxu0 }
 0x320   : >> { %v1794_v59 = vadd.f32 %v1792_v57, %v1780_v58  ;;  %v1782_v60 = vpop.f32.mrb[1].mxu0 }
 0x321   : >> { %v1795_v61 = vadd.f32 %v1792_v57, %v1782_v60 }
 0x322   : >> { %v4247_v62 = vmax.f32 %v1794_v59, 0.0 }
 0x323   : >> { %v1797_v63 = vmax.f32 %v1795_v61, 0.0 }
 0x324   : >> { %1814 = vrot.lane.b32.xlu1 %v4247_v62, %s3879_s6 }
 0x325   : >> { %1806 = vrot.lane.b32.xlu0 %v1797_v63, %s3881_s24 }
 0x328   : >> { %1816 = vrot.lane.b32.xlu1 %v1797_v63, %s3879_s6  ;;  %s4543_s6 = smov (%p1010_p11), 80  }
 0x329   : >> { %1973 = vrot.lane.b32.xlu0 %v1797_v63, %s3882_s29 }
 0x32c   : >> { %1804 = vrot.lane.b32.xlu1 %v4247_v62, %s3881_s24  ;;  %s4532_s24 = smov 113  }
 0x32d   : >> { %2058 = vrot.lane.b32.xlu0 %v4247_v62, %s3884_s20 }
 0x330   : >> { %1971 = vrot.lane.b32.xlu1 %v4247_v62, %s3882_s29  ;;  %s4545_s29 = smov (%p1010_p11), 112  }
 0x331   : >> { %2068 = vrot.lane.b32.xlu0 %v3544_v56, %s3885_s19  ;;  %s4533_s19 = smov 80  }
 0x334   : >> { %1981 = vrot.lane.b32.xlu1 %v3544_v56, %s3883_s30 }
 0x335   : >> { %2224 = vrot.lane.b32.xlu0 %v1797_v63, %s3887_s11 }
 0x338   : >> { %2060 = vrot.lane.b32.xlu1 %v1797_v63, %s3884_s20  ;;  %s4539_s20 = smov (%p1010_p11), 120  }
 0x339   : >> { %2232 = vrot.lane.b32.xlu0 %v3544_v56, %s4530_s9  ;;  %s4547_s9 = smov (%p1010_p11), 1  }
 0x33c   : >> { %2145 = vrot.lane.b32.xlu1 %v3544_v56, %s4531_s17  ;;  %s4548_s17 = smov (%p1010_p11), 111  }
 0x33d   : >> { %2309 = vrot.lane.b32.xlu0 %v4247_v62, %s4532_s24 }
 0x340   : >> { %2222 = vrot.lane.b32.xlu1 %v4247_v62, %s3887_s11  ;;  %s4538_s11 = smov (%p1010_p11), 127  }
 0x341   : >> { %2396 = vrot.lane.b32.xlu0 %v4247_v62, %s3883_s30 }
 0x344   : >> { %2311 = vrot.lane.b32.xlu1 %v1797_v63, %s4532_s24  ;;  %s4549_s24 = smov (%p1010_p11), 64  }
 0x345   : >> { %2404 = vrot.lane.b32.xlu0 %v3544_v56, %s3891_s27 }
 0x348   : >> { %2319 = vrot.lane.b32.xlu1 %v3544_v56, %s4533_s19  ;;  %s4550_s19 = smov (%p1010_p11), 104  }
 0x349   : >> { %2481 = vrot.lane.b32.xlu0 %v4247_v62, %s3892_s7 }
 0x34c   : >> { %2398 = vrot.lane.b32.xlu1 %v1797_v63, %s3883_s30  ;;  %s4546_s30 = smov (%p1010_p11), 72  }
 0x34d   : >> { %2572 = vperm.xlu0 %3771, %v3571_v0  }
 0x350   : >> { %2483 = vrot.lane.b32.xlu1 %v1797_v63, %s3892_s7  ;;  %s3607_s7 = sshll.u32 (%p1010_p11), %s3938_s16, 5 }
 0x351   : > { %3772 = vset.pattern.permute.xlu0 (%p1010_p11), %v3873_v11  ;;  %v3597_v11 = vld [vmem:[%s4495_s2 + $0x28] sm:$0xff] (%p1010_p11) }
 0x354   : >> { %2491 = vrot.lane.b32.xlu1 %v3544_v56, %s3893_s26  ;;  %s4536_s26 = smov (%p1010_p11), 16  }
 0x396   : >> { %v1815_v5 = vpop.permute.xlu1 %1814 }
 0x397   : >> { %v1807_v12 = vpop.permute.xlu0 %1806 }
 0x39a   : >> { %v1817_v9 = vpop.permute.xlu1 %1816 }
 0x39b   : >> { %v1818_v10 = vsel %vm242_vm2, %v1815_v5, %v1817_v9  ;;  %v1974_v16 = vpop.permute.xlu0 %1973 }
 0x39c   : >> { %1827 = vmatprep.subr.mxu1 %v1818_v10 }
 0x39d   : >> { %3546 = vmatpush1.msk.msra.mxu1 %vm4029_vm3, %v1815_v5 }
 0x39e   : >> { %v1805_v13 = vpop.permute.xlu1 %1804  ;;  %3547 = vmatmul.mubr.msk.f32.vlgmr.msra.gmra.mrb[0].mxu1 %vm250_vm1, %v1824_v4 }
 0x39f   : >> { %v1811_v14 = vsel %vm231_vm8, 0.0, %v1805_v13  ;;  %v1808_v15 = vsel %vm231_vm8, %v1805_v13, %v1807_v12  ;;  %1964 = vmatprep.mubr.f32.mxu1 %v3878_v8  ;;  %v2059_v24 = vpop.permute.xlu0 %2058 }
 0x3a0   : >> { %3548 = vmatprep.subr.msk.mxu1 %vm196_vm9, %v1808_v15  ;;  %v2065_v27 = vsel %vm489_vm13, 0.0, %v2059_v24 }
 0x3a1   : >> { %3549 = vmatpush1.msk.msra.mxu1 %vm195_vm10, %v1811_v14 }
 0x3a2   : >> { %v1972_v17 = vpop.permute.xlu1 %1971 }
 0x3a3   : >> { %v1975_v18 = vsel %vm401_vm11, %v1972_v17, %v1974_v16  ;;  %v1978_v20 = vsel %vm401_vm11, 0.0, %v1972_v17  ;;  %v2069_v28 = vpop.permute.xlu0 %2068 }
 0x3a4   : >> { %3551 = vmatprep.subr.msk.mxu1 %vm206_vm5, %v1975_v18 }
 0x3a6   : >> { %v1982_v21 = vpop.permute.xlu1 %1981  ;;  %3550 = vmatmul.mubr.msk.f32.vlgmr.msra.gmra.mrb[0].mxu1 %vm250_vm1, %v3544_v56 }
 0x3a7   : >> { %3552 = vmatpush1.msk.msra.mxu1 %vm205_vm6, %v1978_v20  ;;  %2049 = vmatprep.mubr.f32.mxu1 %v3878_v8  ;;  %v2225_v31 = vpop.permute.xlu0 %2224 }
 0x3a8   : >> { %v2229_v34 = vsel %vm654_vm4, %v2225_v31, 0.0 }
 0x3aa   : >> { %v2061_v25 = vpop.permute.xlu1 %2060 }
 0x3ab   : >> { %v2062_v26 = vsel %vm489_vm13, %v2059_v24, %v2061_v25  ;;  %v2233_v36 = vpop.permute.xlu0 %2232 }
 0x3ac   : >> { %3554 = vmatprep.subr.msk.mxu1 %vm196_vm9, %v2062_v26 }
 0x3ae   : >> { %v2146_v30 = vpop.permute.xlu1 %2145  ;;  %3553 = vmatmul.mubr.msk.f32.vlgmr.msra.gmra.mrb[0].mxu1 %vm250_vm1, %v1982_v21 }
 0x3af   : >> { %3555 = vmatpush1.msk.msra.mxu1 %vm195_vm10, %v2065_v27  ;;  %2136 = vmatprep.mubr.f32.mxu1 %v3878_v8  ;;  %v2310_v40 = vpop.permute.xlu0 %2309 }
 0x3b0   : >> { %2149 = vmatprep.subr.mxu1 %v1797_v63 }
 0x3b2   : >> { %v2223_v33 = vpop.permute.xlu1 %2222 }
 0x3b3   : >> { %v2226_v37 = vsel %vm654_vm4, %v2223_v33, %v2225_v31  ;;  %v2397_v43 = vpop.permute.xlu0 %2396 }
 0x3b6   : >> { %3556 = vmatmul.mubr.msk.f32.vlgmr.msra.gmra.mrb[0].mxu1 %vm250_vm1, %v2069_v28  ;;  %v2312_v35 = vpop.permute.xlu1 %2311 }
 0x3b7   : >> { %2150 = vmatpush1.msra.mxu1 %v4247_v62  ;;  %2213 = vmatprep.mubr.f32.mxu1 %v3878_v8  ;;  %v2316_v38 = vsel %vm742_vm7, %v2312_v35, 0.0  ;;  %v2313_v41 = vsel %vm742_vm7, %v2310_v40, %v2312_v35  ;;  %v2405_v46 = vpop.permute.xlu0 %2404 }
 0x3b8   : >> { %3558 = vmatprep.subr.msk.mxu1 %vm206_vm5, %v2229_v34 }
 0x3ba   : >> { %v2320_v39 = vpop.permute.xlu1 %2319 }
 0x3bb   : >> { %v2482_v48 = vpop.permute.xlu0 %2481 }
 0x3be   : >> { %3557 = vmatmul.mubr.msk.f32.vlgmr.msra.gmra.mrb[0].mxu1 %vm250_vm1, %v2146_v30  ;;  %v2399_v42 = vpop.permute.xlu1 %2398 }
 0x3bf   : >> { %3559 = vmatpush1.msk.msra.mxu1 %vm205_vm6, %v2226_v37  ;;  %2300 = vmatprep.mubr.f32.mxu1 %v3878_v8  ;;  %v2400_v45 = vsel %vm830_vm12, %v2397_v43, %v2399_v42 }
 0x3c0   : >> { %3561 = vmatprep.subr.msk.mxu1 %vm196_vm9, %v2316_v38 }
 0x3c2   : >> { %v2484_v44 = vpop.permute.xlu1 %2483 }
 0x3c3   : >> { %v2488_v47 = vsel %vm916_vm14, %v2484_v44, 0.0  ;;  %v2485_v49 = vsel %vm916_vm14, %v2482_v48, %v2484_v44 }
 0x3c6   : >> { %3560 = vmatmul.mubr.msk.f32.vlgmr.msra.gmra.mrb[0].mxu1 %vm250_vm1, %v2233_v36  ;;  %v2492_v50 = vpop.permute.xlu1 %2491 }
 0x3c7   : >> { %3562 = vmatpush1.msk.msra.mxu1 %vm195_vm10, %v2313_v41  ;;  %2387 = vmatprep.mubr.f32.mxu1 %v3878_v8 }
 0x3c8   : >> { %3564 = vmatprep.subr.msk.mxu1 %vm830_vm12, %v2399_v42 }
 0x3cc   : >> { %v2573_v51 = vpop.permute.xlu0 %2572 }
 0x3ce   : >> { %3563 = vmatmul.mubr.msk.f32.vlgmr.msra.gmra.mrb[0].mxu1 %vm250_vm1, %v2320_v39  ;;  %v3360_v39 = vunpack.c.l.s4 (%p1010_p11), %v3895_v32 }
 0x3cf   : >> { %2409 = vmatpush1.msra.mxu1 %v2400_v45  ;;  %2472 = vmatprep.mubr.f32.mxu1 %v3878_v8 }
 0x3d0   : >> { %3566 = vmatprep.subr.msk.mxu1 %vm206_vm5, %v2488_v47  ;;  %v3361_v19 = vunpack.c.0.s8 (%p1010_p11), %v3360_v39 }
 0x3d2   : > { %v3364_v47 = vsub.s32 (%p1010_p11), %v3361_v19, %v3976_v2 }
 0x3d6   : >> { %3565 = vmatmul.mubr.msk.f32.vlgmr.msra.gmra.mrb[0].mxu1 %vm250_vm1, %v2405_v46 }
 0x3d7   : >> { %3567 = vmatpush1.msk.msra.mxu1 %vm205_vm6, %v2485_v49  ;;  %2559 = vmatprep.mubr.f32.mxu1 %v3878_v8  ;;  %v3572_v8 = vld [vmem:[%s4494_s1 + $0x28] sm:$0xff] (%p1010_p11) }
 0x3d8   : > { %2924 = vrot.lane.b32.xlu0 (%p1010_p11), %v3572_v8, %s4537_s10  ;;  %s4551_s10 = scalar_lea.vmem (%p1010_p11), [#allocation2], %s3991_s8 }
 0x3de   : >> { %3568 = vmatmul.mubr.msk.f32.vlgmr.msra.gmra.mrb[0].mxu1 %vm250_vm1, %v2492_v50 }
 0x3df   : > { %2670 = vmatprep.mubr.f32.mxu1 (%p1010_p11), %v3863_v3 }
 0x4b1   : >> { %v2561_v52 = vpop.f32.mrb[0].mxu1  ;;  %1012 = sbr.rel (!%p1010_p11) target bundleno = 400 (0x190), region = 80 }
 0x4b2   : >> { %v2575_v53 = vadd.f32 %v2573_v51, %v2561_v52  ;;  %v2563_v54 = vpop.f32.mrb[1].mxu1 }
 0x4b3   : >> { %v2576_v55 = vadd.f32 %v2573_v51, %v2563_v54 }
 0x4b4   : >> { %v2577_v56 = vadd.f32 %v3855_v6, %v2575_v53  }
 0x4b5   : >> { %v2578_v57 = vadd.f32 %v3851_v7, %v2576_v55  }
 0x4b6   : >> { %v4535_v6 = vmov %v2577_v56  ;;  %2593 = vrot.lane.b32.xlu0 (%p1010_p11), %v2577_v56, %s4536_s26 }
 0x4b7   : >> { %v4534_v7 = vmov %v2578_v57  ;;  %2595 = vrot.lane.b32.xlu1 (%p1010_p11), %v2578_v57, %s4536_s26  ;;  %2928 = vmatprep.subr.mxu0 (%p1010_p11), %v2578_v57 }
 0x4b8   : > { %2929 = vmatpush1.msra.mxu0 %v2577_v56  ;;  %v2925_v7 = vpop.permute.xlu0 %2924 }
 0x4b9   : > { %3585 = vmatmul.mubr.msk.f32.vlgmr.msra.gmra.mrb[0].mxu0 %vm250_vm1, %v2925_v7 }
 0x4ba   : > { %3001 = vrot.lane.b32.xlu0 %v2577_v56, %s4538_s11  ;;  %3079 = vmatprep.mubr.f32.mxu0 %v3863_v3 }
 0x4bb   : > { %3003 = vrot.lane.b32.xlu1 %v2578_v57, %s4538_s11  ;;  %s3394_s11 = sshll.u32 %s4551_s10, 4  ;;  %s4449_s11 = int_to_ptr.vmem [resolvable:$true] %s3394_s11 }
 0x4be   : > { %3011 = vrot.lane.b32.xlu0 %v3572_v8, %s4541_s28  ;;  %s4447_s28 = scalar_lea.hbm %s4496_s3, %s3607_s7 }
 0x4bf   : > { %2602 = vrot.lane.b32.xlu1 %v3572_v8, %s4539_s20 }
 0x4c2   : > { %2585 = vrot.lane.b32.xlu0 %v2578_v57, %s4540_s25 }
 0x4c3   : > { %2583 = vrot.lane.b32.xlu1 %v2577_v56, %s4540_s25 }
 0x4c6   : > { %3088 = vrot.lane.b32.xlu0 %v2577_v56, %s4542_s4 }
 0x4c7   : > { %3090 = vrot.lane.b32.xlu1 %v2578_v57, %s4542_s4  ;;  %s4552_s4 = smov %s4551_s10 }
 0x4ca   : > { %2750 = vrot.lane.b32.xlu0 %v2577_v56, %s4544_s5 }
 0x4cb   : > { %3098 = vrot.lane.b32.xlu1 %v3572_v8, %s4543_s6  ;;  %s4553_s6 = sand.u32 1, %s3839_s13  }
 0x4cc   : > { %s3380_s16 = scalar_lea.sflag [#allocation3], %s4553_s6 }
 0x4ce   : > { %3175 = vrot.lane.b32.xlu0 %v2577_v56, %s4545_s29 }
 0x4cf   : > { %2752 = vrot.lane.b32.xlu1 %v2578_v57, %s4544_s5  ;;  %s3773_s5 = scalar_lea.vmem %s4449_s11, 32 }
 0x4d0   : > { %p3774_p12 = scmp.ne.s32.totalorder %s4449_s11, %s3773_s5 }
 0x4d2   : > { %2760 = vrot.lane.b32.xlu0 %v3572_v8, %s4545_s29  ;;  %p3775_p13 = pnand %p3774_p12, %p3955_p5 }
 0x4d3   : > { %3177 = vrot.lane.b32.xlu1 %v2578_v57, %s4545_s29  ;;  %s3896_s29 = smov [#allocation2]  }
 0x4d4   : > { %p3776_p0 = pneg %p3775_p13 }
 0x4d6   : > { %2837 = vrot.lane.b32.xlu0 %v2577_v56, %s4547_s9 }
 0x4d7   : > { %3183 = vrot.lane.b32.xlu1 %v3572_v8, %s4546_s30  ;;  %s3777_s30 = sshll.u32 %s3896_s29, 4  ;;  %s3778_s30 = int_to_ptr.vmem [resolvable:$false] %s3777_s30 }
 0x4d8   : > { %p3780_p1 = scmp.lt.s32.totalorder %s4449_s11, %s3778_s30 }
 0x4da   : > { %3262 = vrot.lane.b32.xlu0 %v2578_v57, %s4548_s17 }
 0x4db   : > { %2839 = vrot.lane.b32.xlu1 %v2578_v57, %s4547_s9  ;;  %s3779_s9 = scalar_lea.vmem %s3778_s30, 64 }
 0x4dc   : > { %p3781_p2 = scmp.lt.s32.totalorder %s3779_s9, %s3773_s5 }
 0x4de   : > { %2847 = vrot.lane.b32.xlu0 %v3572_v8, %s4550_s19  ;;  %p3782_p3 = por %p3781_p2, %p3780_p1 }
 0x4df   : > { %3260 = vrot.lane.b32.xlu1 %v2577_v56, %s4548_s17 }
 0x4e0   : > { %p3783_p4 = pnand %p3782_p3, %p3776_p0 }
 0x4e2   : > { %3351 = vperm.xlu0 %3772, %v3597_v11  }
 0x4e3   : > { %3270 = vrot.lane.b32.xlu1 %v3572_v8, %s4549_s24 }
 0x528   : > { %v2594_v59 = vpop.permute.xlu0 %2593 }
 0x529   : > { %v2596_v6 = vpop.permute.xlu1 %2595 }
 0x52a   : > { %v2597_v61 = vsel %vm242_vm2, %v2594_v59, %v2596_v6 }
 0x52b   : > { %2606 = vmatprep.subr.mxu1 %v2597_v61 }
 0x52c   : > { %3574 = vmatpush1.msk.msra.mxu1 %vm4029_vm3, %v2594_v59  ;;  %v3002_v63 = vpop.permute.xlu0 %3001 }
 0x52d   : > { %v3004_v58 = vpop.permute.xlu1 %3003 }
 0x52e   : > { %v3008_v60 = vsel %vm654_vm4, %v3004_v58, 0.0  ;;  %v3005_v0 = vsel %vm654_vm4, %v3002_v63, %v3004_v58 }
 0x52f   : > { %3586 = vmatprep.subr.msk.mxu0 %vm206_vm5, %v3008_v60 }
 0x530   : > { %3587 = vmatpush1.msk.msra.mxu0 %vm205_vm6, %v3005_v0  ;;  %v3012_v5 = vpop.permute.xlu0 %3011 }
 0x531   : > { %v2603_v62 = vpop.permute.xlu1 %2602  ;;  %3588 = vmatmul.mubr.msk.f32.vlgmr.msra.gmra.mrb[0].mxu0 %vm250_vm1, %v3012_v5 }
 0x532   : > { %3575 = vmatmul.mubr.msk.f32.vlgmr.msra.gmra.mrb[0].mxu1 %vm250_vm1, %v2603_v62  ;;  %3166 = vmatprep.mubr.f32.mxu0 %v3863_v3 }
 0x533   : > { %2743 = vmatprep.mubr.f32.mxu1 %v3863_v3 }
 0x534   : > { %v2586_v10 = vpop.permute.xlu0 %2585 }
 0x535   : > { %v2584_v4 = vpop.permute.xlu1 %2583 }
 0x536   : > { %v2587_v12 = vsel %vm231_vm8, %v2584_v4, %v2586_v10  ;;  %v2590_v13 = vsel %vm231_vm8, 0.0, %v2584_v4 }
 0x537   : > { %3576 = vmatprep.subr.msk.mxu1 %vm196_vm9, %v2587_v12 }
 0x538   : > { %3577 = vmatpush1.msk.msra.mxu1 %vm195_vm10, %v2590_v13  ;;  %v3089_v15 = vpop.permute.xlu0 %3088 }
 0x539   : > { %v3091_v9 = vpop.permute.xlu1 %3090 }
 0x53a   : > { %v3095_v22 = vsel %vm742_vm7, %v3091_v9, 0.0  ;;  %3578 = vmatmul.mubr.msk.f32.vlgmr.msra.gmra.mrb[0].mxu1 %vm250_vm1, %v3572_v8  ;;  %v3092_v16 = vsel %vm742_vm7, %v3089_v15, %v3091_v9 }
 0x53b   : > { %3589 = vmatprep.subr.msk.mxu0 %vm196_vm9, %v3095_v22  ;;  %2828 = vmatprep.mubr.f32.mxu1 %v3863_v3 }
 0x53c   : > { %3590 = vmatpush1.msk.msra.mxu0 %vm195_vm10, %v3092_v16  ;;  %v2751_v18 = vpop.permute.xlu0 %2750 }
 0x53d   : > { %v3099_v14 = vpop.permute.xlu1 %3098  ;;  %v2757_v20 = vsel %vm401_vm11, 0.0, %v2751_v18 }
 0x53e   : > { %3591 = vmatmul.mubr.msk.f32.vlgmr.msra.gmra.mrb[0].mxu0 %vm250_vm1, %v3099_v14 }
 0x53f   : > { %3251 = vmatprep.mubr.f32.mxu0 %v3863_v3 }
 0x540   : > { %v3176_v25 = vpop.permute.xlu0 %3175 }
 0x541   : > { %v2753_v17 = vpop.permute.xlu1 %2752 }
 0x542   : > { %v2754_v21 = vsel %vm401_vm11, %v2751_v18, %v2753_v17 }
 0x543   : > { %3579 = vmatprep.subr.msk.mxu1 %vm206_vm5, %v2754_v21 }
 0x544   : > { %3580 = vmatpush1.msk.msra.mxu1 %vm205_vm6, %v2757_v20  ;;  %v2761_v28 = vpop.permute.xlu0 %2760 }
 0x545   : > { %v3178_v24 = vpop.permute.xlu1 %3177  ;;  %3581 = vmatmul.mubr.msk.f32.vlgmr.msra.gmra.mrb[0].mxu1 %vm250_vm1, %v2761_v28 }
 0x546   : > { %3592 = vmatprep.subr.msk.mxu0 %vm830_vm12, %v3178_v24  ;;  %v3179_v26 = vsel %vm830_vm12, %v3176_v25, %v3178_v24  ;;  %2915 = vmatprep.mubr.f32.mxu1 %v3863_v3 }
 0x547   : > { %3188 = vmatpush1.msra.mxu0 %v3179_v26 }
 0x548   : > { %v2838_v31 = vpop.permute.xlu0 %2837 }
 0x549   : > { %v3184_v27 = vpop.permute.xlu1 %3183  ;;  %v2844_v33 = vsel %vm489_vm13, 0.0, %v2838_v31 }
 0x54a   : > { %3593 = vmatmul.mubr.msk.f32.vlgmr.msra.gmra.mrb[0].mxu0 %vm250_vm1, %v3184_v27 }
 0x54b   : > { %3338 = vmatprep.mubr.f32.mxu0 %v3863_v3 }
 0x54c   : > { %v3263_v36 = vpop.permute.xlu0 %3262 }
 0x54d   : > { %v2840_v30 = vpop.permute.xlu1 %2839  ;;  %v3267_v38 = vsel %vm916_vm14, %v3263_v36, 0.0 }
 0x54e   : > { %v2841_v34 = vsel %vm489_vm13, %v2838_v31, %v2840_v30  ;;  %3594 = vmatprep.subr.msk.mxu0 %vm206_vm5, %v3267_v38 }
 0x54f   : > { %3582 = vmatprep.subr.msk.mxu1 %vm196_vm9, %v2841_v34 }
 0x550   : > { %3583 = vmatpush1.msk.msra.mxu1 %vm195_vm10, %v2844_v33  ;;  %v2848_v29 = vpop.permute.xlu0 %2847 }
 0x551   : > { %v3261_v35 = vpop.permute.xlu1 %3260  ;;  %3584 = vmatmul.mubr.msk.f32.vlgmr.msra.gmra.mrb[0].mxu1 %vm250_vm1, %v2848_v29 }
 0x552   : > { %v3264_v37 = vsel %vm916_vm14, %v3261_v35, %v3263_v36 }
 0x553   : > { %3595 = vmatpush1.msk.msra.mxu0 %vm205_vm6, %v3264_v37 }
 0x555   : > { %v3271_v3 = vpop.permute.xlu1 %3270 }
 0x556   : > { %3596 = vmatmul.mubr.msk.f32.vlgmr.msra.gmra.mrb[0].mxu0 %vm250_vm1, %v3271_v3 }
 0x561   : > { %v3352_v41 = vpop.permute.xlu0 %3351 }
 0x624   : > { %v2917_v42 = vpop.f32.mrb[0].mxu1 }
 0x625   : > { %v2919_v45 = vpop.f32.mrb[1].mxu1 }
 0x629   : > { %v3340_v40 = vpop.f32.mrb[0].mxu0 }
 0x62a   : > { %v3342_v43 = vpop.f32.mrb[1].mxu0  ;;  %v3656_v44 = vadd.f32 %v3340_v40, %v2917_v42 }
 0x62b   : > { %v3657_v23 = vadd.f32 %v3342_v43, %v2919_v45 }
 0x62c   : > { %v3354_v46 = vadd.f32 %v3656_v44, %v3352_v41 }
 0x62d   : > { %v3355_v48 = vadd.f32 %v3657_v23, %v3352_v41 }
 0x62f   : > { %v3358_v49 = vcombine.low %v3354_v46, %v3355_v48 }
 0x631   : > { %v3365_v50 = vrot.slane %v3358_v49, %v3364_v47 }
 0x633   : > { %v3372_v51 = vrot.slane %v3365_v50, %v3364_v47 }
 0x635   : > { %3378 = vst.msk [vmem:[%s4552_s4] sm:$0x3] %vm3376_vm15, %v3372_v51 }
 0x636   : > { %3786 = shalt.err (!%p3783_p4)
}
 0x637   : > { %s3787_s8 = scalar_lea.hbm %s4447_s28, 32  ;;  %s3791_s19 = scalar_lea.hbm %s4496_s3, 64 }
 0x638   : > { %p3788_p7 = scmp.ne.s32.totalorder %s4447_s28, %s3787_s8  ;;  %p3792_p10 = scmp.lt.u32.totalorder %s4447_s28, %s4496_s3 }
 0x639   : > { %p3793_p11 = scmp.lt.u32.totalorder %s3791_s19, %s3787_s8  ;;  %p3795_p13 = scmp.lt.u32.totalorder %s3787_s8, %s4447_s28 }
 0x63a   : > { %p3789_p8 = pnand %p3788_p7, %p3955_p5 }
 0x63b   : > { %p3794_p12 = por %p3793_p11, %p3792_p10 }
 0x63c   : > { %p3790_p9 = pneg %p3789_p8 }
 0x63d   : > { %p3796_p0 = por %p3795_p13, %p3794_p12 }
 0x63f   : > { %p3797_p1 = pnand %p3796_p0, %p3790_p9 }
 0x641   : > { %3800 = shalt.err (!%p3797_p1)
}
 0x642   : > { %3672 = dma.vmem_to_hbm [thread:$0]  (%p3955_p5), %s4449_s11, 32, %s4447_s28, %s3380_s16  }
 0x643 PF: > { %p3678_p2 = scmp.ge.s32.totalorder %s3847_s15, 2  ;;  %s3406_s7 = sand.u32 1, %s3835_s12  }
 0x644   : > { %s3407_s10 = scalar_lea.sflag [#allocation3], %s3406_s7 }
 0x645   : > { %p3675_p3 = pnand %p3678_p2, %p3959_p6 }
 0x647   : > { %3830 = dma.done.wait (!%p3675_p3), %s3407_s10, 32  }
 0x648   : > { %3832 = vsyncadd (!%p3675_p3), %s3407_s10, 4294967264  ;;  %p13_p4 = scmp.ge.s32.totalorder %s3942_s18, 4   ;;  %s4554_s12 = smov %s3839_s13 }
 0x649   : > { %s4555_s13 = smov %s3843_s14  ;;  %s4556_s14 = smov %s3953_s21 }
 0x64a   : > { %s4557_s15 = smov %s3942_s18  ;;  %15 = sbr.rel (!%p13_p4) target bundleno = 3 (0x3), region = 91 }
 0x651   :  { %3412 = vsyncpa [#allocation3], 1 }
 0x652   :  { %3414 = vsyncpa [#allocation3 + $0x1], 1 }

</bundles_post_ra>
